<compile_context>
chip_gen: v7x
topology: tpu7x:2x2x1
jax: 0.10.0
libtpu: 0.0.40
codegen_flags: <defaults>
</compile_context>

<pallas_src>
import jax
import jax.numpy as jnp
from jax.experimental import pallas as pl
from jax.experimental.pallas import tpu as pltpu


# ---------------------------------------------------------------------------
# Fused backbone: conv(7x7,s2,p3)+BN+ReLU -> 1x1 feat conv+BN+ReLU -> avg pool
# ---------------------------------------------------------------------------
def _backbone_apply(params, patches, p_valid, tp):
    """patches: [B, P_pad, Kp] bf16 im2col patches. Returns [B, 1024] f32."""
    B, P_pad, Kp = patches.shape
    n_p = P_pad // tp
    Cmid = params["conv_w"].shape[1]     # 64
    Cfeat = params["feat_w"].shape[1]    # 1024
    inv_p = 1.0 / float(p_valid)
    pad_rows = P_pad - p_valid           # padded rows (all in the last tile)

    def kernel(patches_ref, wconv_ref, bconv_ref, wfeat_ref, bfeat_ref, o_ref):
        p_idx = pl.program_id(1)
        last = pl.num_programs(1) - 1

        @pl.when(p_idx == 0)
        def _init():
            o_ref[...] = jnp.zeros_like(o_ref)

        # 7x7/s2 conv as matmul over im2col patches; BN scale folded into W,
        # BN shift applied as a bias. ReLU.
        h1 = jnp.dot(patches_ref[0], wconv_ref[...],
                     preferred_element_type=jnp.float32)
        h1 = jnp.maximum(h1 + bconv_ref[...], 0.0)

        # features_extractor stand-in: 1x1 conv 64->1024 + folded BN + ReLU.
        h2 = jnp.dot(h1.astype(jnp.bfloat16), wfeat_ref[...],
                     preferred_element_type=jnp.float32)
        h2 = jnp.maximum(h2 + bfeat_ref[...], 0.0)

        # Incremental global-average-pool: sum into the VMEM-resident output
        # block (same block index for every p), scale once at the end.
        tile_sum = jnp.sum(h2, axis=0, keepdims=True).reshape(1, 1, Cfeat)
        o_ref[...] += tile_sum

        if pad_rows > 0:
            # Padded patch rows are all-zero, so each contributes the constant
            # vector relu(relu(conv_b) @ feat_w + feat_b).  Subtract it once
            # (last tile only) instead of masking every tile.
            @pl.when(p_idx == last)
            def _unpad():
                h1p = jnp.maximum(bconv_ref[...], 0.0)                 # [1,Cmid]
                h2p = jnp.dot(h1p.astype(jnp.bfloat16), wfeat_ref[...],
                              preferred_element_type=jnp.float32)
                h2p = jnp.maximum(h2p + bfeat_ref[...], 0.0)           # [1,Cfeat]
                o_ref[...] -= (float(pad_rows) * h2p).reshape(1, 1, Cfeat)

        @pl.when(p_idx == last)
        def _finalize():
            o_ref[...] *= inv_p

    flops = 2 * B * P_pad * Kp * Cmid + 2 * B * P_pad * Cmid * Cfeat
    bytes_accessed = (patches.size * 2                       # bf16 patches
                      + Kp * Cmid * 2 + Cmid * Cfeat * 2     # bf16 weights
                      + (Cmid + Cfeat) * 4                   # f32 shifts
                      + B * Cfeat * 4)                       # f32 output

    out = pl.pallas_call(
        kernel,
        out_shape=jax.ShapeDtypeStruct((B, 1, Cfeat), jnp.float32),
        grid=(B, n_p),
        in_specs=[
            pl.BlockSpec((1, tp, Kp), lambda b, p: (b, p, 0)),
            pl.BlockSpec((Kp, Cmid), lambda b, p: (0, 0)),
            pl.BlockSpec((1, Cmid), lambda b, p: (0, 0)),
            pl.BlockSpec((Cmid, Cfeat), lambda b, p: (0, 0)),
            pl.BlockSpec((1, Cfeat), lambda b, p: (0, 0)),
        ],
        out_specs=pl.BlockSpec((1, 1, Cfeat), lambda b, p: (b, 0, 0)),
        compiler_params=pltpu.CompilerParams(
            dimension_semantics=("parallel", "arbitrary")),
        cost_estimate=pl.CostEstimate(flops=flops, transcendentals=0,
                                      bytes_accessed=bytes_accessed),
    )(patches, params["conv_w"], params["conv_b"],
      params["feat_w"], params["feat_b"])
    return out.reshape(B, Cfeat)


# ---------------------------------------------------------------------------
# Pose head: fc1(2048->512) -> ReLU -> fc2(512->512) -> [fc_xyz | fc_quat]
# fc1's K axis is split over the grid so its weight DMA overlaps accumulation.
# ---------------------------------------------------------------------------
def _head_apply(params, combined, tk=512):
    K = combined.shape[1]                 # 2048
    H1 = params["fc1_w"].shape[1]         # 512
    NF = params["fc2_w"].shape[1]         # 512
    NO = params["fc_pose_w"].shape[1]     # 7
    n_k = K // tk

    def kernel(f_ref, w1_ref, b1_ref, w2_ref, b2_ref, w3_ref, b3_ref,
               o_ref, h1_acc):
        k = pl.program_id(0)

        @pl.when(k == 0)
        def _init():
            h1_acc[...] = jnp.zeros_like(h1_acc)

        h1_acc[...] += jnp.dot(f_ref[...], w1_ref[...],
                               preferred_element_type=jnp.float32)

        @pl.when(k == pl.num_programs(0) - 1)
        def _finish():
            h1 = jnp.maximum(h1_acc[...] + b1_ref[...], 0.0)
            h2 = jnp.dot(h1.astype(jnp.bfloat16), w2_ref[...],
                         preferred_element_type=jnp.float32) + b2_ref[...]
            o_ref[...] = jnp.dot(h2.astype(jnp.bfloat16), w3_ref[...],
                                 preferred_element_type=jnp.float32) + b3_ref[...]

    out = pl.pallas_call(
        kernel,
        out_shape=jax.ShapeDtypeStruct((1, NO), jnp.float32),
        grid=(n_k,),
        in_specs=[
            pl.BlockSpec((1, tk), lambda k: (0, k)),      # combined chunk
            pl.BlockSpec((tk, H1), lambda k: (k, 0)),     # fc1 weight chunk
            pl.BlockSpec((1, H1), lambda k: (0, 0)),
            pl.BlockSpec((H1, NF), lambda k: (0, 0)),
            pl.BlockSpec((1, NF), lambda k: (0, 0)),
            pl.BlockSpec((NF, NO), lambda k: (0, 0)),
            pl.BlockSpec((1, NO), lambda k: (0, 0)),
        ],
        out_specs=pl.BlockSpec((1, NO), lambda k: (0, 0)),
        scratch_shapes=[pltpu.VMEM((1, H1), jnp.float32)],
        compiler_params=pltpu.CompilerParams(
            dimension_semantics=("arbitrary",)),
    )(combined, params["fc1_w"], params["fc1_b"],
      params["fc2_w"], params["fc2_b"],
      params["fc_pose_w"], params["fc_pose_b"])
    return out[0]  # [7] = cat(xyz, quat)


# ---------------------------------------------------------------------------
# Glue: im2col + parameter setup (BN folding, dtype casts) in plain JAX
# ---------------------------------------------------------------------------
def _im2col(x_chw, k, stride, pad):
    """CHW image -> [Ho*Wo, C*k*k] bf16 patches, inner order (c, kh, kw)
    matching torch Conv2d weight.reshape(Cout, -1)."""
    C, H, W = x_chw.shape
    xp = jnp.pad(x_chw.astype(jnp.bfloat16), ((0, 0), (pad, pad), (pad, pad)))
    Ho = (H + 2 * pad - k) // stride + 1
    Wo = (W + 2 * pad - k) // stride + 1
    cols = []
    for i in range(k):
        for j in range(k):
            cols.append(xp[:, i:i + stride * Ho:stride, j:j + stride * Wo:stride])
    p = jnp.stack(cols, axis=1)                 # [C, k*k, Ho, Wo]
    return p.reshape(C * k * k, Ho * Wo).T      # [P, C*k*k]


def _fold_bn(w2d, gamma, beta, mean, var, eps):
    """Fold inference-mode BN into a [K, Cout] weight; return (bf16 W', f32 shift)."""
    scale = gamma / jnp.sqrt(var + eps)
    shift = beta - mean * scale
    return (w2d * scale[None, :]).astype(jnp.bfloat16), shift[None, :].astype(jnp.float32)


def init_params(key):
    ks = jax.random.split(key, 8)
    p = {}
    eps = 1e-3

    # init_conv: Conv2d(4, 64, k=7, s=2, p=3, bias=False) + BatchNorm2d(64, eps=1e-3)
    conv_w = jax.random.normal(ks[0], (64, 4, 7, 7), jnp.float32) * 0.05
    w2d = conv_w.reshape(64, -1).T                                # [196, 64]
    p["conv_w"], p["conv_b"] = _fold_bn(
        w2d, jnp.ones(64), jnp.zeros(64), jnp.zeros(64), jnp.ones(64), eps)

    # features_extractor stand-in: 1x1 conv 64 -> 1024 + BN (folded)
    feat_w = jax.random.normal(ks[1], (64, 1024), jnp.float32) * 0.05
    p["feat_w"], p["feat_b"] = _fold_bn(
        feat_w, jnp.ones(1024), jnp.zeros(1024), jnp.zeros(1024), jnp.ones(1024), eps)

    # fc1: 2048 -> 512, fc2: 512 -> 512 (torch default uniform init)
    b1 = 1.0 / jnp.sqrt(2048.0)
    p["fc1_w"] = jax.random.uniform(ks[2], (2048, 512), jnp.float32, -b1, b1).astype(jnp.bfloat16)
    p["fc1_b"] = jax.random.uniform(ks[3], (1, 512), jnp.float32, -b1, b1)
    b2 = 1.0 / jnp.sqrt(512.0)
    p["fc2_w"] = jax.random.uniform(ks[4], (512, 512), jnp.float32, -b2, b2).astype(jnp.bfloat16)
    p["fc2_b"] = jax.random.uniform(ks[5], (1, 512), jnp.float32, -b2, b2)

    # fc_xyz: 512 -> 3, fc_quat: 512 -> 4 (kaiming_normal, bias = 0); concat -> [512, 7]
    std = jnp.sqrt(2.0 / 512.0)
    w_xyz = jax.random.normal(ks[6], (512, 3), jnp.float32) * std
    w_quat = jax.random.normal(ks[7], (512, 4), jnp.float32) * std
    p["fc_pose_w"] = jnp.concatenate([w_xyz, w_quat], axis=1).astype(jnp.bfloat16)  # [512, 7]
    p["fc_pose_b"] = jnp.zeros((1, 7), jnp.float32)
    return p


@jax.jit
def forward(params, x):
    # x: [2, 4, H, W] (two 4-channel images, CHW), float32
    patches = jnp.stack([_im2col(x[0], k=7, stride=2, pad=3),
                         _im2col(x[1], k=7, stride=2, pad=3)], axis=0)  # [2, P, 196] bf16
    P = patches.shape[1]

    # Tile the output-pixel axis; multiple of 16 (bf16 sublane pack), cap 1024
    # (~6 MB/step VMEM: fits every chip's default scoped VMEM incl. v5e/v7x).
    tp = min(1024, P)
    tp = ((tp + 15) // 16) * 16
    n_p = -(-P // tp)
    P_pad = n_p * tp
    if P_pad != P:
        patches = jnp.pad(patches, ((0, 0), (0, P_pad - P), (0, 0)))

    feats = _backbone_apply(params, patches, P, tp)           # [2, 1024]
    combined = feats.reshape(1, 2048).astype(jnp.bfloat16)    # cat(feat1, feat2)
    return _head_apply(params, combined)                      # [7] = [xyz(3) | quat(4)]


if __name__ == "__main__":
    key = jax.random.PRNGKey(0)
    x = jax.random.normal(key, (2, 4, 16, 16), jnp.float32)
    params = init_params(jax.random.PRNGKey(42))
    poses = forward(params, x)
    poses = jax.block_until_ready(poses)
    assert poses.shape == (7,) and poses.dtype == jnp.float32
    assert bool(jnp.all(jnp.isfinite(poses)))
    print("KERNEL_OK")
</pallas_src>

<mosaic_0001>
module attributes {stable_mosaic.version = 11 : i64} {
  func.func @kernel(%arg0: i32, %arg1: memref<1x512xbf16, #tpu.memory_space<vmem>>, %arg2: memref<512x512xbf16, #tpu.memory_space<vmem>>, %arg3: memref<1x512xf32, #tpu.memory_space<vmem>>, %arg4: memref<512x512xbf16, #tpu.memory_space<vmem>>, %arg5: memref<1x512xf32, #tpu.memory_space<vmem>>, %arg6: memref<512x7xbf16, #tpu.memory_space<vmem>>, %arg7: memref<1x7xf32, #tpu.memory_space<vmem>>, %arg8: memref<1x7xf32, #tpu.memory_space<vmem>>, %arg9: memref<1x512xf32, #tpu.memory_space<vmem>>) attributes {dimension_semantics = [#tpu.dimension_semantics<arbitrary>], iteration_bounds = array<i64: 4>, scalar_prefetch = 0 : i64, scratch_operands = 1 : i64, tpu.core_type = #tpu.core_type<tc>, window_params = [{transform_indices = @transform_0, window_bounds = array<i64: 1, 512>}, {transform_indices = @transform_1, window_bounds = array<i64: 512, 512>}, {pipeline_mode = #tpu.pipeline_mode<synchronous>, transform_indices = @transform_2, window_bounds = array<i64: 1, 512>}, {pipeline_mode = #tpu.pipeline_mode<synchronous>, transform_indices = @transform_3, window_bounds = array<i64: 512, 512>}, {pipeline_mode = #tpu.pipeline_mode<synchronous>, transform_indices = @transform_4, window_bounds = array<i64: 1, 512>}, {pipeline_mode = #tpu.pipeline_mode<synchronous>, transform_indices = @transform_5, window_bounds = array<i64: 512, 7>}, {pipeline_mode = #tpu.pipeline_mode<synchronous>, transform_indices = @transform_6, window_bounds = array<i64: 1, 7>}, {pipeline_mode = #tpu.pipeline_mode<synchronous>, transform_indices = @transform_7, window_bounds = array<i64: 1, 7>}]} {
    %c0_i32 = arith.constant 0 : i32
    %0 = arith.cmpi eq, %arg0, %c0_i32 : i32
    %1 = arith.extui %0 : i1 to i32
    %c0_i32_0 = arith.constant 0 : i32
    %2 = arith.cmpi ne, %1, %c0_i32_0 : i32
    scf.if %2 {
      %cst_9 = arith.constant 0.000000e+00 : f32
      %12 = vector.broadcast %cst_9 : f32 to vector<1x512xf32>
      %c0_10 = arith.constant 0 : index
      %c0_11 = arith.constant 0 : index
      %13 = vector.load %arg9[%c0_10, %c0_11] : memref<1x512xf32, #tpu.memory_space<vmem>>, vector<1x512xf32>
      tpu.vector_store %arg9[%c0_10, %c0_11], %12 {strides = array<i32>} : memref<1x512xf32, #tpu.memory_space<vmem>>, vector<1x512xf32>,
    } else {
    }
    %c0 = arith.constant 0 : index
    %c0_1 = arith.constant 0 : index
    %3 = vector.load %arg9[%c0, %c0_1] : memref<1x512xf32, #tpu.memory_space<vmem>>, vector<1x512xf32>
    %c0_2 = arith.constant 0 : index
    %c0_3 = arith.constant 0 : index
    %4 = vector.load %arg1[%c0_2, %c0_3] : memref<1x512xbf16, #tpu.memory_space<vmem>>, vector<1x512xbf16>
    %c0_4 = arith.constant 0 : index
    %c0_5 = arith.constant 0 : index
    %5 = vector.load %arg2[%c0_4, %c0_5] : memref<512x512xbf16, #tpu.memory_space<vmem>>, vector<512x512xbf16>
    %cst = arith.constant dense<0.000000e+00> : vector<1x512xf32>
    %6 = tpu.matmul %4, %5, %cst {dimension_numbers = #tpu.dot_dimension_numbers<[1], [0], [0], [1], [0, 0, 1, 1], [], []>} : vector<1x512xbf16>, vector<512x512xbf16>, vector<1x512xf32> -> vector<1x512xf32>
    %7 = arith.addf %3, %6 : vector<1x512xf32>
    %c0_6 = arith.constant 0 : index
    %c0_7 = arith.constant 0 : index
    %8 = vector.load %arg9[%c0_6, %c0_7] : memref<1x512xf32, #tpu.memory_space<vmem>>, vector<1x512xf32>
    tpu.vector_store %arg9[%c0_6, %c0_7], %7 {strides = array<i32>} : memref<1x512xf32, #tpu.memory_space<vmem>>, vector<1x512xf32>,
    %c3_i32 = arith.constant 3 : i32
    %9 = arith.cmpi eq, %arg0, %c3_i32 : i32
    %10 = arith.extui %9 : i1 to i32
    %c0_i32_8 = arith.constant 0 : i32
    %11 = arith.cmpi ne, %10, %c0_i32_8 : i32
    scf.if %11 {
      %c0_9 = arith.constant 0 : index
      %c0_10 = arith.constant 0 : index
      %12 = vector.load %arg9[%c0_9, %c0_10] : memref<1x512xf32, #tpu.memory_space<vmem>>, vector<1x512xf32>
      %c0_11 = arith.constant 0 : index
      %c0_12 = arith.constant 0 : index
      %13 = vector.load %arg3[%c0_11, %c0_12] : memref<1x512xf32, #tpu.memory_space<vmem>>, vector<1x512xf32>
      %14 = arith.addf %12, %13 : vector<1x512xf32>
      %cst_13 = arith.constant 0.000000e+00 : f32
      %15 = vector.broadcast %cst_13 : f32 to vector<1x512xf32>
      %16 = arith.maximumf %14, %15 : vector<1x512xf32>
      %17 = arith.truncf %16 : vector<1x512xf32> to vector<1x512xbf16>
      %c0_14 = arith.constant 0 : index
      %c0_15 = arith.constant 0 : index
      %18 = vector.load %arg4[%c0_14, %c0_15] : memref<512x512xbf16, #tpu.memory_space<vmem>>, vector<512x512xbf16>
      %cst_16 = arith.constant dense<0.000000e+00> : vector<1x512xf32>
      %19 = tpu.matmul %17, %18, %cst_16 {dimension_numbers = #tpu.dot_dimension_numbers<[1], [0], [0], [1], [0, 0, 1, 1], [], []>} : vector<1x512xbf16>, vector<512x512xbf16>, vector<1x512xf32> -> vector<1x512xf32>
      %c0_17 = arith.constant 0 : index
      %c0_18 = arith.constant 0 : index
      %20 = vector.load %arg5[%c0_17, %c0_18] : memref<1x512xf32, #tpu.memory_space<vmem>>, vector<1x512xf32>
      %21 = arith.addf %19, %20 : vector<1x512xf32>
      %22 = arith.truncf %21 : vector<1x512xf32> to vector<1x512xbf16>
      %c0_19 = arith.constant 0 : index
      %c0_20 = arith.constant 0 : index
      %23 = vector.load %arg6[%c0_19, %c0_20] : memref<512x7xbf16, #tpu.memory_space<vmem>>, vector<512x7xbf16>
      %cst_21 = arith.constant dense<0.000000e+00> : vector<1x7xf32>
      %24 = tpu.matmul %22, %23, %cst_21 {dimension_numbers = #tpu.dot_dimension_numbers<[1], [0], [0], [1], [0, 0, 1, 1], [], []>} : vector<1x512xbf16>, vector<512x7xbf16>, vector<1x7xf32> -> vector<1x7xf32>
      %c0_22 = arith.constant 0 : index
      %c0_23 = arith.constant 0 : index
      %25 = vector.load %arg7[%c0_22, %c0_23] : memref<1x7xf32, #tpu.memory_space<vmem>>, vector<1x7xf32>
      %26 = arith.addf %24, %25 : vector<1x7xf32>
      %c0_24 = arith.constant 0 : index
      %c0_25 = arith.constant 0 : index
      %27 = vector.load %arg8[%c0_24, %c0_25] : memref<1x7xf32, #tpu.memory_space<vmem>>, vector<1x7xf32>
      tpu.vector_store %arg8[%c0_24, %c0_25], %26 {strides = array<i32>} : memref<1x7xf32, #tpu.memory_space<vmem>>, vector<1x7xf32>,
    } else {
    }
    return
  }
  func.func @transform_0(%arg0: i32) -> (i32, i32) {
    %c0_i32 = arith.constant 0 : i32
    %c0_i32_0 = arith.constant 0 : i32
    return %c0_i32, %arg0 : i32, i32
  }
  func.func @transform_1(%arg0: i32) -> (i32, i32) {
    %c0_i32 = arith.constant 0 : i32
    %c0_i32_0 = arith.constant 0 : i32
    return %arg0, %c0_i32 : i32, i32
  }
  func.func @transform_2(%arg0: i32) -> (i32, i32) {
    %c0_i32 = arith.constant 0 : i32
    %c0_i32_0 = arith.constant 0 : i32
    %c0_i32_1 = arith.constant 0 : i32
    return %c0_i32, %c0_i32_0 : i32, i32
  }
  func.func @transform_3(%arg0: i32) -> (i32, i32) {
    %c0_i32 = arith.constant 0 : i32
    %c0_i32_0 = arith.constant 0 : i32
    %c0_i32_1 = arith.constant 0 : i32
    return %c0_i32, %c0_i32_0 : i32, i32
  }
  func.func @transform_4(%arg0: i32) -> (i32, i32) {
    %c0_i32 = arith.constant 0 : i32
    %c0_i32_0 = arith.constant 0 : i32
    %c0_i32_1 = arith.constant 0 : i32
    return %c0_i32, %c0_i32_0 : i32, i32
  }
  func.func @transform_5(%arg0: i32) -> (i32, i32) {
    %c0_i32 = arith.constant 0 : i32
    %c0_i32_0 = arith.constant 0 : i32
    %c0_i32_1 = arith.constant 0 : i32
    return %c0_i32, %c0_i32_0 : i32, i32
  }
  func.func @transform_6(%arg0: i32) -> (i32, i32) {
    %c0_i32 = arith.constant 0 : i32
    %c0_i32_0 = arith.constant 0 : i32
    %c0_i32_1 = arith.constant 0 : i32
    return %c0_i32, %c0_i32_0 : i32, i32
  }
  func.func @transform_7(%arg0: i32) -> (i32, i32) {
    %c0_i32 = arith.constant 0 : i32
    %c0_i32_0 = arith.constant 0 : i32
    %c0_i32_1 = arith.constant 0 : i32
    return %c0_i32, %c0_i32_0 : i32, i32
  }
}

module attributes {stable_mosaic.version = 11 : i64} {
  func.func @kernel(%arg0: i32, %arg1: i32, %arg2: memref<1x64x196xbf16, #tpu.memory_space<vmem>>, %arg3: memref<196x64xbf16, #tpu.memory_space<vmem>>, %arg4: memref<1x64xf32, #tpu.memory_space<vmem>>, %arg5: memref<64x1024xbf16, #tpu.memory_space<vmem>>, %arg6: memref<1x1024xf32, #tpu.memory_space<vmem>>, %arg7: memref<1x1x1024xf32, #tpu.memory_space<vmem>>) attributes {dimension_semantics = [#tpu.dimension_semantics<parallel>, #tpu.dimension_semantics<arbitrary>], iteration_bounds = array<i64: 2, 1>, scalar_prefetch = 0 : i64, scratch_operands = 0 : i64, tpu.core_type = #tpu.core_type<tc>, window_params = [{transform_indices = @transform_0, window_bounds = array<i64: 1, 64, 196>}, {pipeline_mode = #tpu.pipeline_mode<synchronous>, transform_indices = @transform_1, window_bounds = array<i64: 196, 64>}, {pipeline_mode = #tpu.pipeline_mode<synchronous>, transform_indices = @transform_2, window_bounds = array<i64: 1, 64>}, {pipeline_mode = #tpu.pipeline_mode<synchronous>, transform_indices = @transform_3, window_bounds = array<i64: 64, 1024>}, {pipeline_mode = #tpu.pipeline_mode<synchronous>, transform_indices = @transform_4, window_bounds = array<i64: 1, 1024>}, {transform_indices = @transform_5, window_bounds = array<i64: 1, 1, 1024>}]} {
    %c0_i32 = arith.constant 0 : i32
    %0 = arith.cmpi eq, %arg1, %c0_i32 : i32
    %1 = arith.extui %0 : i1 to i32
    %c0_i32_0 = arith.constant 0 : i32
    %2 = arith.cmpi ne, %1, %c0_i32_0 : i32
    scf.if %2 {
      %cst_23 = arith.constant 0.000000e+00 : f32
      %29 = vector.broadcast %cst_23 : f32 to vector<1x1x1024xf32>
      %c0_24 = arith.constant 0 : index
      %c0_25 = arith.constant 0 : index
      %c0_26 = arith.constant 0 : index
      %30 = vector.load %arg7[%c0_24, %c0_25, %c0_26] : memref<1x1x1024xf32, #tpu.memory_space<vmem>>, vector<1x1x1024xf32>
      tpu.vector_store %arg7[%c0_24, %c0_25, %c0_26], %29 {strides = array<i32>} : memref<1x1x1024xf32, #tpu.memory_space<vmem>>, vector<1x1x1024xf32>,
    } else {
    }
    %c0 = arith.constant 0 : index
    %c0_1 = arith.constant 0 : index
    %c0_2 = arith.constant 0 : index
    %3 = vector.load %arg2[%c0, %c0_1, %c0_2] : memref<1x64x196xbf16, #tpu.memory_space<vmem>>, vector<1x64x196xbf16>
    %4 = vector.shape_cast %3 : vector<1x64x196xbf16> to vector<64x196xbf16>
    %c0_3 = arith.constant 0 : index
    %c0_4 = arith.constant 0 : index
    %5 = vector.load %arg3[%c0_3, %c0_4] : memref<196x64xbf16, #tpu.memory_space<vmem>>, vector<196x64xbf16>
    %cst = arith.constant dense<0.000000e+00> : vector<64x64xf32>
    %6 = tpu.matmul %4, %5, %cst {dimension_numbers = #tpu.dot_dimension_numbers<[1], [0], [0], [1], [0, 0, 1, 1], [], []>} : vector<64x196xbf16>, vector<196x64xbf16>, vector<64x64xf32> -> vector<64x64xf32>
    %c0_5 = arith.constant 0 : index
    %c0_6 = arith.constant 0 : index
    %7 = vector.load %arg4[%c0_5, %c0_6] : memref<1x64xf32, #tpu.memory_space<vmem>>, vector<1x64xf32>
    %8 = vector.broadcast %7 : vector<1x64xf32> to vector<64x64xf32>
    %9 = arith.addf %6, %8 : vector<64x64xf32>
    %cst_7 = arith.constant 0.000000e+00 : f32
    %10 = vector.broadcast %cst_7 : f32 to vector<64x64xf32>
    %11 = arith.maximumf %9, %10 : vector<64x64xf32>
    %12 = arith.truncf %11 : vector<64x64xf32> to vector<64x64xbf16>
    %c0_8 = arith.constant 0 : index
    %c0_9 = arith.constant 0 : index
    %13 = vector.load %arg5[%c0_8, %c0_9] : memref<64x1024xbf16, #tpu.memory_space<vmem>>, vector<64x1024xbf16>
    %cst_10 = arith.constant dense<0.000000e+00> : vector<64x1024xf32>
    %14 = tpu.matmul %12, %13, %cst_10 {dimension_numbers = #tpu.dot_dimension_numbers<[1], [0], [0], [1], [0, 0, 1, 1], [], []>} : vector<64x64xbf16>, vector<64x1024xbf16>, vector<64x1024xf32> -> vector<64x1024xf32>
    %c0_11 = arith.constant 0 : index
    %c0_12 = arith.constant 0 : index
    %15 = vector.load %arg6[%c0_11, %c0_12] : memref<1x1024xf32, #tpu.memory_space<vmem>>, vector<1x1024xf32>
    %16 = vector.broadcast %15 : vector<1x1024xf32> to vector<64x1024xf32>
    %17 = arith.addf %14, %16 : vector<64x1024xf32>
    %cst_13 = arith.constant 0.000000e+00 : f32
    %18 = vector.broadcast %cst_13 : f32 to vector<64x1024xf32>
    %19 = arith.maximumf %17, %18 : vector<64x1024xf32>
    %cst_14 = arith.constant dense<0.000000e+00> : vector<1024xf32>
    %20 = vector.multi_reduction <add>, %19, %cst_14 [0] : vector<64x1024xf32> to vector<1024xf32>
    %21 = vector.shape_cast %20 : vector<1024xf32> to vector<1x1024xf32>
    %22 = vector.shape_cast %21 : vector<1x1024xf32> to vector<1x1x1024xf32>
    %c0_15 = arith.constant 0 : index
    %c0_16 = arith.constant 0 : index
    %c0_17 = arith.constant 0 : index
    %23 = vector.load %arg7[%c0_15, %c0_16, %c0_17] : memref<1x1x1024xf32, #tpu.memory_space<vmem>>, vector<1x1x1024xf32>
    %24 = arith.addf %23, %22 : vector<1x1x1024xf32>
    %c0_18 = arith.constant 0 : index
    %c0_19 = arith.constant 0 : index
    %c0_20 = arith.constant 0 : index
    %25 = vector.load %arg7[%c0_18, %c0_19, %c0_20] : memref<1x1x1024xf32, #tpu.memory_space<vmem>>, vector<1x1x1024xf32>
    tpu.vector_store %arg7[%c0_18, %c0_19, %c0_20], %24 {strides = array<i32>} : memref<1x1x1024xf32, #tpu.memory_space<vmem>>, vector<1x1x1024xf32>,
    %c0_i32_21 = arith.constant 0 : i32
    %26 = arith.cmpi eq, %arg1, %c0_i32_21 : i32
    %27 = arith.extui %26 : i1 to i32
    %c0_i32_22 = arith.constant 0 : i32
    %28 = arith.cmpi ne, %27, %c0_i32_22 : i32
    scf.if %28 {
      %c0_23 = arith.constant 0 : index
      %c0_24 = arith.constant 0 : index
      %c0_25 = arith.constant 0 : index
      %29 = vector.load %arg7[%c0_23, %c0_24, %c0_25] : memref<1x1x1024xf32, #tpu.memory_space<vmem>>, vector<1x1x1024xf32>
      %cst_26 = arith.constant 1.562500e-02 : f32
      %30 = vector.broadcast %cst_26 : f32 to vector<1x1x1024xf32>
      %31 = arith.mulf %29, %30 : vector<1x1x1024xf32>
      %c0_27 = arith.constant 0 : index
      %c0_28 = arith.constant 0 : index
      %c0_29 = arith.constant 0 : index
      %32 = vector.load %arg7[%c0_27, %c0_28, %c0_29] : memref<1x1x1024xf32, #tpu.memory_space<vmem>>, vector<1x1x1024xf32>
      tpu.vector_store %arg7[%c0_27, %c0_28, %c0_29], %31 {strides = array<i32>} : memref<1x1x1024xf32, #tpu.memory_space<vmem>>, vector<1x1x1024xf32>,
    } else {
    }
    return
  }
  func.func @transform_0(%arg0: i32, %arg1: i32) -> (i32, i32, i32) {
    %c0_i32 = arith.constant 0 : i32
    %c0_i32_0 = arith.constant 0 : i32
    return %arg0, %arg1, %c0_i32 : i32, i32, i32
  }
  func.func @transform_1(%arg0: i32, %arg1: i32) -> (i32, i32) {
    %c0_i32 = arith.constant 0 : i32
    %c0_i32_0 = arith.constant 0 : i32
    %c0_i32_1 = arith.constant 0 : i32
    return %c0_i32, %c0_i32_0 : i32, i32
  }
  func.func @transform_2(%arg0: i32, %arg1: i32) -> (i32, i32) {
    %c0_i32 = arith.constant 0 : i32
    %c0_i32_0 = arith.constant 0 : i32
    %c0_i32_1 = arith.constant 0 : i32
    return %c0_i32, %c0_i32_0 : i32, i32
  }
  func.func @transform_3(%arg0: i32, %arg1: i32) -> (i32, i32) {
    %c0_i32 = arith.constant 0 : i32
    %c0_i32_0 = arith.constant 0 : i32
    %c0_i32_1 = arith.constant 0 : i32
    return %c0_i32, %c0_i32_0 : i32, i32
  }
  func.func @transform_4(%arg0: i32, %arg1: i32) -> (i32, i32) {
    %c0_i32 = arith.constant 0 : i32
    %c0_i32_0 = arith.constant 0 : i32
    %c0_i32_1 = arith.constant 0 : i32
    return %c0_i32, %c0_i32_0 : i32, i32
  }
  func.func @transform_5(%arg0: i32, %arg1: i32) -> (i32, i32, i32) {
    %c0_i32 = arith.constant 0 : i32
    %c0_i32_0 = arith.constant 0 : i32
    %c0_i32_1 = arith.constant 0 : i32
    return %arg0, %c0_i32, %c0_i32_0 : i32, i32, i32
  }
}

</mosaic_0001>

<bundles_post_ra>
// kernel: forward.2
= control target key start
LH: loop header
LB: loop body
LE: loop exit
PB: predicated region body
PF: predicated region fallthrough
CT: control target
= control target key end

     0   :  { %s1542_s18 = smov 0   ;;  %s1544_s19 = smov 0   ;;  %s1928_s0 = inlined_call_operand.vmem [shape: bf16[2,64,196], index: 0, kind: input, shape index: {}]   ;;  %s1929_s1 = inlined_call_operand.vmem [shape: bf16[196,64], index: 1, kind: input, shape index: {}]   ;;  %s1930_s2 = inlined_call_operand.vmem [shape: f32[1,64], index: 2, kind: input, shape index: {}]   ;;  %s1931_s3 = inlined_call_operand.vmem [shape: bf16[64,1024], index: 3, kind: input, shape index: {}]   ;;  %s1932_s4 = inlined_call_operand.vmem [shape: f32[1,1024], index: 4, kind: input, shape index: {}]   ;;  %s1933_s5 = inlined_call_operand.vmem [shape: f32[2,1,1024], index: 5, kind: output, shape index: {}]  }
   0x1   :  { %s1546_s20 = smov 0  }
   0x2 LB: > { %s27_s21 = sadd.s32 1, %s1504_s19  ;;  %p1353_p0 = scmp.ge.s32.totalorder %s1508_s20, 1  ;;  %s1508_s20 = sphi %s1546_s20, %s15_s20   ;;  %s1504_s19 = sphi %s1544_s19, %s1935_s19   ;;  %s1500_s18 = sphi %s1542_s18, %s1934_s18  }
   0x3   : > { %p29_p1 = scmp.ge.s32.totalorder %s27_s21, 2  ;;  %p207_p2 = scmp.lt.s32.totalorder %s1508_s20, 3 }
   0x5   : > { %s1937_s21 = smov (%p29_p1, %s27_s21), 0  ;;  %p208_p3 = pnand %p1353_p0, %p207_p2 }
   0x6   : > { %v1461_v0 = vld [vmem:[%s1929_s1] sm:$0xff] (!%p208_p3)   ;;  %v1510_v1 = vmov (!%p208_p3), 0   ;;  %v1462_v2 = vld [vmem:[%s1929_s1 + $0x8] sm:$0xff] (!%p208_p3)   ;;  %p240_p4 = scmp.lt.s32.totalorder (!%p208_p3), %s1500_s18, 1  ;;  %v1463_v3 = vld [vmem:[%s1929_s1 + $0x10] sm:$0xff] (!%p208_p3)   ;;  %vm411_vm0 = vcmask (!%p208_p3), 556032  }
   0x7   : > { %211 = sbr.rel (%p208_p3) target bundleno = 613 (0x265), region = 40  ;;  %428 = vmatprep.subr.bf16.mxu0 (!%p208_p3), %v1510_v1  ;;  %784 = vmatprep.mubr.bf16.mxu1 (!%p208_p3), %v1510_v1  ;;  %v1464_v4 = vld [vmem:[%s1929_s1 + $0x18] sm:$0xff] (!%p208_p3)   ;;  %v1465_v6 = vld [vmem:[%s1929_s1 + $0x20] sm:$0xff] (!%p208_p3)   ;;  %v1466_v7 = vld [vmem:[%s1929_s1 + $0x28] sm:$0xff] (!%p208_p3)   ;;  %vm424_vm1 = vcmask (!%p208_p3), 1041408   ;;  %vm739_vm2 = vcmask (!%p208_p3), 523264  }
   0x8   : > { %429 = vmatpush1.bf16.msra.mxu0 (!%p208_p3), %v1461_v0  ;;  %v505_v8 = vld [vmem:[%s1931_s3] sm:$0xff] (!%p208_p3)  ;;  %v1467_v15 = vld [vmem:[%s1929_s1 + $0x30] sm:$0xff] (!%p208_p3)   ;;  %v1468_v17 = vld [vmem:[%s1929_s1 + $0x38] sm:$0xff] (!%p208_p3)  }
   0x9   : > { %430 = vmatprep.subr.bf16.mxu0 (!%p208_p3), %v1510_v1  ;;  %v509_v9 = vld [vmem:[%s1931_s3 + $0x20] sm:$0xff] (!%p208_p3)  ;;  %v1470_v19 = vld [vmem:[%s1929_s1 + $0x48] sm:$0xff] (!%p208_p3)   ;;  %v1471_v20 = vld [vmem:[%s1929_s1 + $0x50] sm:$0xff] (!%p208_p3)  }
   0xa   : > { %v1384_v10 = vcombine.high (!%p208_p3), %v505_v8, %v509_v9  ;;  %v1383_v11 = vcombine.low (!%p208_p3), %v505_v8, %v509_v9  ;;  %v513_v12 = vld [vmem:[%s1931_s3 + $0x40] sm:$0xff] (!%p208_p3)  ;;  %v1472_v21 = vld [vmem:[%s1929_s1 + $0x58] sm:$0xff] (!%p208_p3)   ;;  %v506_v55 = vld [vmem:[%s1931_s3 + $0x8] sm:$0xff] (!%p208_p3) }
   0xb   : > { %v517_v13 = vld [vmem:[%s1931_s3 + $0x60] sm:$0xff] (!%p208_p3)  ;;  %v508_v23 = vld [vmem:[%s1931_s3 + $0x18] sm:$0xff] (!%p208_p3)  ;;  %v510_v56 = vld [vmem:[%s1931_s3 + $0x28] sm:$0xff] (!%p208_p3) }
   0xc   : > { %431 = vmatpush1.bf16.msra.mxu0 (!%p208_p3), %v1462_v2  ;;  %v1392_v14 = vcombine.high (!%p208_p3), %v513_v12, %v517_v13  ;;  %752 = vmatprep.subr.bf16.mxu1 (!%p208_p3), %v1384_v10  ;;  %v1391_v16 = vcombine.low (!%p208_p3), %v513_v12, %v517_v13  ;;  %v1469_v18 = vld [vmem:[%s1929_s1 + $0x40] sm:$0xff] (!%p208_p3)   ;;  %v512_v24 = vld [vmem:[%s1931_s3 + $0x38] sm:$0xff] (!%p208_p3)  ;;  %v1385_v57 = vcombine.low (!%p208_p3), %v506_v55, %v510_v56  ;;  %v522_v10 = vld [vmem:[%s1931_s3 + $0x88] sm:$0xff] (!%p208_p3) }
   0xd   : > { %432 = vmatprep.subr.bf16.mxu0 (!%p208_p3), %v1510_v1  ;;  %753 = vmatpush1.bf16.msra.mxu1 (!%p208_p3), %v1383_v11  ;;  %v1473_v22 = vld [vmem:[%s1929_s1 + $0x60] ss:$0 sps:$4 sm:$0x33] (!%p208_p3)   ;;  %v1390_v26 = vcombine.high (!%p208_p3), %v508_v23, %v512_v24  ;;  %v516_v27 = vld [vmem:[%s1931_s3 + $0x58] sm:$0xff] (!%p208_p3)  ;;  %v1389_v31 = vcombine.low (!%p208_p3), %v508_v23, %v512_v24  ;;  %v1386_v58 = vcombine.high (!%p208_p3), %v506_v55, %v510_v56  ;;  %v526_v11 = vld [vmem:[%s1931_s3 + $0xa8] sm:$0xff] (!%p208_p3) }
   0xe   : > { %s1939_s18 = smov (!%p240_p4, %s1500_s18), 1  ;;  %754 = vmatprep.subr.bf16.mxu1 %v1392_v14  ;;  %v426_v25 = vsel %vm424_vm1, %v1473_v22, 0  ;;  %v520_v28 = vld [vmem:[%s1931_s3 + $0x78] sm:$0xff]  ;;  %v521_v39 = vld [vmem:[%s1931_s3 + $0x80] sm:$0xff]  ;;  %v534_v22 = vld [vmem:[%s1931_s3 + $0xe8] sm:$0xff]  ;;  %v1401_v24 = vcombine.low %v522_v10, %v526_v11 }
   0xf   : > { %s1433_s28 = sshll.u32 %s1939_s18, 6  ;;  %v1398_v32 = vcombine.high %v516_v27, %v520_v28  ;;  %v1397_v33 = vcombine.low %v516_v27, %v520_v28  ;;  %v525_v40 = vld [vmem:[%s1931_s3 + $0xa0] sm:$0xff]  ;;  %v524_v41 = vld [vmem:[%s1931_s3 + $0x98] sm:$0xff]  ;;  %v531_v56 = vld [vmem:[%s1931_s3 + $0xd0] sm:$0xff]  ;;  %s1356_s12 = sshll.u32 %s1939_s18, 3 }
  0x10   : > { %433 = vmatpush1.bf16.msra.mxu0 %v1463_v3  ;;  %s1582_s8 = scalar_lea.vmem %s1928_s0, %s1433_s28  ;;  %v1400_v42 = vcombine.high %v521_v39, %v525_v40  ;;  %v528_v43 = vld [vmem:[%s1931_s3 + $0xb8] sm:$0xff]  ;;  %v1399_v44 = vcombine.low %v521_v39, %v525_v40  ;;  %v529_v47 = vld [vmem:[%s1931_s3 + $0xc0] sm:$0xff]  ;;  %v514_v3 = vld [vmem:[%s1931_s3 + $0x48] sm:$0xff]  ;;  %s253_s15 = scalar_lea.vmem %s1933_s5, %s1356_s12 }
  0x11   : > { %434 = vmatprep.subr.bf16.mxu0 %v1510_v1  ;;  %v1476_v5 = vld [vmem:[%s1582_s8 + $0x4] ss:$8 sps:$4 sm:$0xff]   ;;  %755 = vmatpush1.bf16.msra.mxu1 %v1391_v16  ;;  %v1474_v29 = vld [vmem:[%s1582_s8] ss:$8 sps:$4 sm:$0xff]   ;;  %v1477_v30 = vld [vmem:[%s1582_s8 + $0x14] ss:$8 sps:$4 sm:$0xff]   ;;  %v1405_v45 = vcombine.low %v524_v41, %v528_v43  ;;  %v1406_v46 = vcombine.high %v524_v41, %v528_v43 }
  0x12   : > { %1379 = vmatprep.mubr.msk.bf16.mxu0 %vm411_vm0, %v1476_v5  ;;  %v1479_v34 = vld [vmem:[%s1582_s8 + $0x10] ss:$8 sps:$4 sm:$0xff]   ;;  %v1480_v35 = vld [vmem:[%s1582_s8 + $0x24] ss:$8 sps:$4 sm:$0xff]   ;;  %v1482_v36 = vld [vmem:[%s1582_s8 + $0x20] ss:$8 sps:$4 sm:$0xff]   ;;  %756 = vmatprep.subr.bf16.mxu1 %v1400_v42 }
  0x13   : > { %v1483_v37 = vld [vmem:[%s1582_s8 + $0x34] ss:$8 sps:$4 sm:$0xff]   ;;  %v1485_v38 = vld [vmem:[%s1582_s8 + $0x30] ss:$8 sps:$4 sm:$0xff]   ;;  %v533_v48 = vld [vmem:[%s1931_s3 + $0xe0] sm:$0xff] }
  0x14   : > { %435 = vmatpush1.bf16.msra.mxu0 %v1464_v4  ;;  %v532_v49 = vld [vmem:[%s1931_s3 + $0xd8] sm:$0xff]  ;;  %v1408_v50 = vcombine.high %v529_v47, %v533_v48  ;;  %v1407_v52 = vcombine.low %v529_v47, %v533_v48  ;;  %v1691_v59 = vld [vmem:[%s1930_s2] ss:$0 sm:$0xff]  ;;  %v518_v4 = vld [vmem:[%s1931_s3 + $0x68] sm:$0xff] }
  0x15   : > { %436 = vmatprep.subr.bf16.mxu0 %v1510_v1  ;;  %757 = vmatpush1.bf16.msra.mxu1 %v1399_v44  ;;  %v536_v51 = vld [vmem:[%s1931_s3 + $0xf8] sm:$0xff]  ;;  %v1394_v8 = vcombine.high %v514_v3, %v518_v4  ;;  %v515_v48 = vld [vmem:[%s1931_s3 + $0x50] sm:$0xff] }
  0x16   : > { %v1413_v53 = vcombine.low %v532_v49, %v536_v51  ;;  %v1414_v54 = vcombine.high %v532_v49, %v536_v51  ;;  %758 = vmatprep.subr.bf16.mxu1 %v1408_v50  ;;  %v519_v49 = vld [vmem:[%s1931_s3 + $0x70] sm:$0xff] }
  0x17   : > { %v1396_v51 = vcombine.high %v515_v48, %v519_v49 }
  0x18   : > { %437 = vmatpush1.bf16.msra.mxu0 %v1465_v6 }
  0x19   : > { %438 = vmatprep.subr.bf16.mxu0 %v1510_v1  ;;  %759 = vmatpush1.bf16.msra.mxu1 %v1407_v52  ;;  %v523_v52 = vld [vmem:[%s1931_s3 + $0x90] sm:$0xff] }
  0x1a   : > { %825 = vmatprep.subr.bf16.mxu1 %v1386_v58 }
  0x1c   : > { %439 = vmatpush1.bf16.msra.mxu0 %v1466_v7 }
  0x1d   : > { %440 = vmatprep.subr.bf16.mxu0 %v1510_v1 }
  0x20   : > { %441 = vmatpush1.bf16.msra.mxu0 %v1467_v15  ;;  %v1393_v15 = vcombine.low %v514_v3, %v518_v4 }
  0x21   : > { %442 = vmatprep.subr.bf16.mxu0 %v1510_v1 }
  0x24   : > { %443 = vmatpush1.bf16.msra.mxu0 %v1468_v17 }
  0x25   : > { %444 = vmatprep.subr.bf16.mxu0 %v1510_v1 }
  0x28   : > { %445 = vmatpush1.bf16.msra.mxu0 %v1469_v18  ;;  %v1402_v18 = vcombine.high %v522_v10, %v526_v11 }
  0x29   : > { %446 = vmatprep.subr.bf16.mxu0 %v1510_v1 }
  0x2c   : > { %447 = vmatpush1.bf16.msra.mxu0 %v1470_v19 }
  0x2d   : > { %448 = vmatprep.subr.bf16.mxu0 %v1510_v1 }
  0x30   : > { %449 = vmatpush1.bf16.msra.mxu0 %v1471_v20 }
  0x31   : > { %450 = vmatprep.subr.bf16.mxu0 %v1510_v1 }
  0x34   : > { %451 = vmatpush1.bf16.msra.mxu0 %v1472_v21  ;;  %v530_v21 = vld [vmem:[%s1931_s3 + $0xc8] sm:$0xff] }
  0x35   : > { %452 = vmatprep.subr.bf16.mxu0 %v1510_v1 }
  0x38   : > { %453 = vmatpush1.bf16.msra.mxu0 %v426_v25 }
  0x39   : > { %971 = vmatprep.subr.bf16.mxu0 %v1390_v26  ;;  %v1410_v26 = vcombine.high %v530_v21, %v534_v22 }
  0x3b   : > { %461 = vmatmul.mubr.bf16.vlgmr.msra.gmra.mrb[0].mxu0 %v1474_v29  ;;  %v507_v29 = vld [vmem:[%s1931_s3 + $0x10] sm:$0xff] }
  0x3c   : > { %1380 = vmatprep.mubr.msk.bf16.mxu0 %vm411_vm0, %v1477_v30  ;;  %972 = vmatpush1.bf16.msra.mxu0 %v1389_v31  ;;  %v511_v30 = vld [vmem:[%s1931_s3 + $0x30] sm:$0xff] }
  0x3d   : > { %973 = vmatprep.subr.bf16.mxu0 %v1398_v32  ;;  %v1387_v50 = vcombine.low %v507_v29, %v511_v30 }
  0x40   : > { %974 = vmatpush1.bf16.msra.mxu0 %v1397_v33 }
  0x41   : > { %975 = vmatprep.subr.bf16.mxu0 %v1406_v46 }
  0x43   : > { %469 = vmatmul.mubr.bf16.gmra.mrb[4].mxu0 %v1479_v34  ;;  %v1409_v34 = vcombine.low %v530_v21, %v534_v22 }
  0x44   : > { %1381 = vmatprep.mubr.msk.bf16.mxu0 %vm411_vm0, %v1480_v35  ;;  %976 = vmatpush1.bf16.msra.mxu0 %v1405_v45  ;;  %v1388_v35 = vcombine.high %v507_v29, %v511_v30 }
  0x45   : > { %977 = vmatprep.subr.bf16.mxu0 %v1414_v54  ;;  %v1395_v54 = vcombine.low %v515_v48, %v519_v49 }
  0x48   : > { %978 = vmatpush1.bf16.msra.mxu0 %v1413_v53  ;;  %v527_v53 = vld [vmem:[%s1931_s3 + $0xb0] sm:$0xff] }
  0x49   : > { %v1404_v55 = vcombine.high %v523_v52, %v527_v53  ;;  %v1403_v58 = vcombine.low %v523_v52, %v527_v53 }
  0x4b   : > { %477 = vmatmul.mubr.bf16.gmra.mrb[8].mxu0 %v1482_v36 }
  0x4c   : > { %1382 = vmatprep.mubr.msk.bf16.mxu0 %vm411_vm0, %v1483_v37 }
  0x53   : > { %485 = vmatmul.mubr.bf16.gmra.mrb[12].mxu0 %v1485_v38 }
  0x54   : > { %1003 = vmatprep.mubr.bf16.mxu0 %v1510_v1 }
 0x10e   : > { %v462_v60 = vpop.f32.mrb[0].mxu0 }
 0x10f   : > { %v463_v61 = vadd.f32 %v1691_v59, %v462_v60  ;;  %v464_v62 = vpop.f32.mrb[1].mxu0 }
 0x110   : > { %v465_v63 = vpop.f32.mrb[2].mxu0 }
 0x111   : > { %v466_v0 = vadd.f32 %v1691_v59, %v465_v63  ;;  %v467_v2 = vpop.f32.mrb[3].mxu0  ;;  %v493_v5 = vmax.f32 %v463_v61, 0.0  ;;  %v539_v61 = vlaneseq }
 0x112   : > { %v1792_v2 = vld [vmem:[%s1932_s4] sm:$0xff] }
 0x113   : > { %v494_v6 = vmax.f32 %v466_v0, 0.0  ;;  %v1785_v62 = vshrl.u32 %v539_v61, 7 }
 0x115   : > { %v1701_v7 = vpack.c.bf16 %v494_v6, %v493_v5  ;;  %v541_v63 = vsub.s32 0, %v1785_v62  ;;  %v565_v0 = vsub.s32 6, %v1785_v62  ;;  %v545_v3 = vsub.s32 1, %v1785_v62 }
 0x116   : > { %v470_v9 = vpop.f32.mrb[4].mxu0  ;;  %v569_v4 = vsub.s32 7, %v1785_v62 }
 0x117   : > { %v471_v12 = vadd.f32 %v1691_v59, %v470_v9  ;;  %v472_v13 = vpop.f32.mrb[5].mxu0  ;;  %1415 = vmatmul.mubr.msk.bf16.vlgmr.msra.gmra.mrb[0].mxu1 %vm739_vm2, %v1701_v7  ;;  %1427 = vmatmul.mubr.msk.bf16.vlgmr.msra.gmra.mrb[16].mxu0 %vm739_vm2, %v1701_v7  ;;  %v1800_v5 = vrot.slane %v1792_v2, %v565_v0  ;;  %v1803_v6 = vrot.slane %v1792_v2, %v545_v3 }
 0x118   : > { %826 = vmatpush1.bf16.msra.mxu1 %v1385_v57  ;;  %v473_v14 = vpop.f32.mrb[6].mxu0  ;;  %794 = vmatprep.mubr.bf16.mxu1 %v1510_v1  ;;  %v535_v57 = vld [vmem:[%s1931_s3 + $0xf0] sm:$0xff] }
 0x119   : > { %v474_v16 = vadd.f32 %v1691_v59, %v473_v14  ;;  %v475_v17 = vpop.f32.mrb[7].mxu0  ;;  %827 = vmatprep.subr.bf16.mxu1 %v1394_v8  ;;  %1013 = vmatprep.mubr.bf16.mxu0 %v1510_v1  ;;  %v495_v19 = vmax.f32 %v471_v12, 0.0  ;;  %v1411_v60 = vcombine.low %v531_v56, %v535_v57 }
 0x11b   : > { %v496_v20 = vmax.f32 %v474_v16, 0.0 }
 0x11c   : > { %828 = vmatpush1.bf16.msra.mxu1 %v1393_v15 }
 0x11d   : > { %v1723_v23 = vpack.c.bf16 %v496_v20, %v495_v19  ;;  %829 = vmatprep.subr.bf16.mxu1 %v1402_v18 }
 0x11e   : > { %v478_v25 = vpop.f32.mrb[8].mxu0 }
 0x11f   : > { %v479_v27 = vadd.f32 %v1691_v59, %v478_v25  ;;  %v480_v28 = vpop.f32.mrb[9].mxu0  ;;  %1416 = vmatmul.mubr.msk.bf16.gmra.mrb[4].mxu1 %vm739_vm2, %v1723_v23  ;;  %1428 = vmatmul.mubr.msk.bf16.gmra.mrb[20].mxu0 %vm739_vm2, %v1723_v23 }
 0x120   : > { %v481_v31 = vpop.f32.mrb[10].mxu0  ;;  %804 = vmatprep.mubr.bf16.mxu1 %v1510_v1  ;;  %1023 = vmatprep.mubr.bf16.mxu0 %v1510_v1 }
 0x121   : > { %v482_v32 = vadd.f32 %v1691_v59, %v481_v31  ;;  %v483_v33 = vpop.f32.mrb[11].mxu0  ;;  %830 = vmatpush1.bf16.msra.mxu1 %v1401_v24  ;;  %v497_v36 = vmax.f32 %v479_v27, 0.0 }
 0x122   : > { %831 = vmatprep.subr.bf16.mxu1 %v1410_v26 }
 0x123   : > { %v498_v37 = vmax.f32 %v482_v32, 0.0 }
 0x125   : > { %v503_v38 = vpack.c.bf16 %v498_v37, %v497_v36  ;;  %832 = vmatpush1.bf16.msra.mxu1 %v1409_v34 }
 0x126   : > { %v486_v39 = vpop.f32.mrb[12].mxu0  ;;  %898 = vmatprep.subr.bf16.mxu1 %v1388_v35 }
 0x127   : > { %v487_v40 = vadd.f32 %v1691_v59, %v486_v39  ;;  %v488_v41 = vpop.f32.mrb[13].mxu0  ;;  %1417 = vmatmul.mubr.msk.bf16.gmra.mrb[8].mxu1 %vm739_vm2, %v503_v38  ;;  %1429 = vmatmul.mubr.msk.bf16.gmra.mrb[24].mxu0 %vm739_vm2, %v503_v38 }
 0x128   : > { %v489_v42 = vpop.f32.mrb[14].mxu0  ;;  %814 = vmatprep.mubr.bf16.mxu1 %v1510_v1  ;;  %1033 = vmatprep.mubr.bf16.mxu0 %v1510_v1 }
 0x129   : > { %v490_v43 = vadd.f32 %v1691_v59, %v489_v42  ;;  %v491_v44 = vpop.f32.mrb[15].mxu0  ;;  %v499_v45 = vmax.f32 %v487_v40, 0.0  ;;  %v1412_v59 = vcombine.high %v531_v56, %v535_v57 }
 0x12b   : > { %v500_v46 = vmax.f32 %v490_v43, 0.0 }
 0x12d   : > { %v504_v47 = vpack.c.bf16 %v500_v46, %v499_v45 }
 0x12f   : > { %1418 = vmatmul.mubr.msk.bf16.gmra.mrb[12].mxu1 %vm739_vm2, %v504_v47  ;;  %1430 = vmatmul.mubr.msk.bf16.gmra.mrb[28].mxu0 %vm739_vm2, %v504_v47 }
 0x130   : > { %857 = vmatprep.mubr.bf16.mxu1 %v1510_v1 }
 0x137   : > { %1419 = vmatmul.mubr.msk.bf16.vlgmr.msra.gmra.mrb[16].mxu1 %vm739_vm2, %v1701_v7 }
 0x138   : > { %899 = vmatpush1.bf16.msra.mxu1 %v1387_v50  ;;  %867 = vmatprep.mubr.bf16.mxu1 %v1510_v1 }
 0x139   : > { %900 = vmatprep.subr.bf16.mxu1 %v1396_v51 }
 0x13c   : > { %901 = vmatpush1.bf16.msra.mxu1 %v1395_v54 }
 0x13d   : > { %902 = vmatprep.subr.bf16.mxu1 %v1404_v55 }
 0x13f   : > { %1420 = vmatmul.mubr.msk.bf16.gmra.mrb[20].mxu1 %vm739_vm2, %v1723_v23 }
 0x140   : > { %877 = vmatprep.mubr.bf16.mxu1 %v1510_v1  ;;  %903 = vmatpush1.bf16.msra.mxu1 %v1403_v58 }
 0x141   : > { %904 = vmatprep.subr.bf16.mxu1 %v1412_v59 }
 0x144   : > { %905 = vmatpush1.bf16.msra.mxu1 %v1411_v60 }
 0x147   : > { %1421 = vmatmul.mubr.msk.bf16.gmra.mrb[24].mxu1 %vm739_vm2, %v503_v38 }
 0x148   : > { %887 = vmatprep.mubr.bf16.mxu1 %v1510_v1 }
 0x14f   : > { %1422 = vmatmul.mubr.msk.bf16.gmra.mrb[28].mxu1 %vm739_vm2, %v504_v47 }
 0x150   : > { %930 = vmatprep.mubr.bf16.mxu1 %v1510_v1 }
 0x157   : > { %1423 = vmatmul.mubr.msk.bf16.vlgmr.msra.gmra.mrb[32].mxu1 %vm739_vm2, %v1701_v7  ;;  %v1806_v7 = vrot.slane %v1792_v2, %v569_v4 }
 0x158   : > { %940 = vmatprep.mubr.bf16.mxu1 %v1510_v1 }
 0x15f   : > { %1424 = vmatmul.mubr.msk.bf16.gmra.mrb[36].mxu1 %vm739_vm2, %v1723_v23 }
 0x160   : > { %950 = vmatprep.mubr.bf16.mxu1 %v1510_v1 }
 0x167   : > { %1425 = vmatmul.mubr.msk.bf16.gmra.mrb[40].mxu1 %vm739_vm2, %v503_v38 }
 0x168   : > { %960 = vmatprep.mubr.bf16.mxu1 %v1510_v1  ;;  %v1797_v1 = vrot.slane %v1792_v2, %v541_v63 }
 0x16f   : > { %1426 = vmatmul.mubr.msk.bf16.gmra.mrb[44].mxu1 %vm739_vm2, %v504_v47 }
 0x1ea   : > { %v786_v8 = vpop.f32.mrb[0].mxu1  ;;  %v1005_v9 = vpop.f32.mrb[16].mxu0 }
 0x1eb   : > { %v787_v10 = vadd.f32 %v786_v8, %v1797_v1  ;;  %v1006_v11 = vadd.f32 %v1005_v9, %v1800_v5  ;;  %v788_v12 = vpop.f32.mrb[1].mxu1  ;;  %v1007_v13 = vpop.f32.mrb[17].mxu0 }
 0x1ec   : > { %v789_v14 = vadd.f32 %v788_v12, %v1803_v6  ;;  %v1008_v15 = vadd.f32 %v1007_v13, %v1806_v7  ;;  %v790_v16 = vpop.f32.mrb[2].mxu1  ;;  %v1009_v17 = vpop.f32.mrb[18].mxu0 }
 0x1ed   : > { %v791_v18 = vadd.f32 %v790_v16, %v1797_v1  ;;  %v1010_v19 = vadd.f32 %v1009_v17, %v1800_v5  ;;  %v792_v20 = vpop.f32.mrb[3].mxu1  ;;  %v1011_v21 = vpop.f32.mrb[19].mxu0  ;;  %v1044_v24 = vmax.f32 %v787_v10, 0.0  ;;  %v1050_v25 = vmax.f32 %v1006_v11, 0.0 }
 0x1ee   : > { %v793_v22 = vadd.f32 %v792_v20, %v1803_v6  ;;  %v1012_v23 = vadd.f32 %v1011_v21, %v1806_v7  ;;  %v1045_v28 = vmax.f32 %v789_v14, 0.0  ;;  %v1051_v29 = vmax.f32 %v1008_v15, 0.0 }
 0x1ef   : > { %v1052_v26 = vmax.f32 %v791_v18, 0.0  ;;  %v1058_v27 = vmax.f32 %v1010_v19, 0.0  ;;  %v549_v20 = vsub.s32 2, %v1785_v62  ;;  %v553_v21 = vsub.s32 3, %v1785_v62 }
 0x1f0   : > { %v1053_v30 = vmax.f32 %v793_v22, 0.0  ;;  %v1059_v31 = vmax.f32 %v1012_v23, 0.0 }
 0x1f1   : > { %v1108_v32 = vadd.f32 %v1052_v26, %v1044_v24  ;;  %v1186_v33 = vadd.f32 %v1058_v27, %v1050_v25 }
 0x1f2   : > { %v1121_v34 = vadd.f32 %v1053_v30, %v1045_v28  ;;  %v1199_v35 = vadd.f32 %v1059_v31, %v1051_v29  ;;  %v796_v36 = vpop.f32.mrb[4].mxu1  ;;  %v1015_v37 = vpop.f32.mrb[20].mxu0 }
 0x1f3   : > { %v797_v38 = vadd.f32 %v796_v36, %v1797_v1  ;;  %v1016_v39 = vadd.f32 %v1015_v37, %v1800_v5  ;;  %v798_v40 = vpop.f32.mrb[5].mxu1  ;;  %v1017_v41 = vpop.f32.mrb[21].mxu0 }
 0x1f4   : > { %v799_v42 = vadd.f32 %v798_v40, %v1803_v6  ;;  %v1018_v43 = vadd.f32 %v1017_v41, %v1806_v7  ;;  %v800_v44 = vpop.f32.mrb[6].mxu1  ;;  %v1019_v45 = vpop.f32.mrb[22].mxu0 }
 0x1f5   : > { %v1060_v46 = vmax.f32 %v797_v38, 0.0  ;;  %v1066_v47 = vmax.f32 %v1016_v39, 0.0  ;;  %v801_v48 = vadd.f32 %v800_v44, %v1797_v1  ;;  %v1020_v49 = vadd.f32 %v1019_v45, %v1800_v5  ;;  %v802_v50 = vpop.f32.mrb[7].mxu1  ;;  %v1021_v51 = vpop.f32.mrb[23].mxu0 }
 0x1f6   : > { %v1061_v52 = vmax.f32 %v799_v42, 0.0  ;;  %v1067_v53 = vmax.f32 %v1018_v43, 0.0  ;;  %v803_v54 = vadd.f32 %v802_v50, %v1803_v6  ;;  %v1022_v55 = vadd.f32 %v1021_v51, %v1806_v7 }
 0x1f7   : > { %v1109_v56 = vadd.f32 %v1108_v32, %v1060_v46  ;;  %v1187_v57 = vadd.f32 %v1186_v33, %v1066_v47  ;;  %v1068_v58 = vmax.f32 %v801_v48, 0.0  ;;  %v1074_v59 = vmax.f32 %v1020_v49, 0.0 }
 0x1f8   : > { %v1122_v60 = vadd.f32 %v1121_v34, %v1061_v52  ;;  %v1200_v61 = vadd.f32 %v1199_v35, %v1067_v53  ;;  %v1069_v63 = vmax.f32 %v803_v54, 0.0  ;;  %v1075_v0 = vmax.f32 %v1022_v55, 0.0 }
 0x1f9   : > { %v1110_v3 = vadd.f32 %v1109_v56, %v1068_v58  ;;  %v1188_v4 = vadd.f32 %v1187_v57, %v1074_v59  ;;  %v1839_v54 = vrot.slane %v1792_v2, %v549_v20  ;;  %v1842_v55 = vrot.slane %v1792_v2, %v553_v21 }
 0x1fa   : > { %v1123_v8 = vadd.f32 %v1122_v60, %v1069_v63  ;;  %v1201_v9 = vadd.f32 %v1200_v61, %v1075_v0  ;;  %v806_v10 = vpop.f32.mrb[8].mxu1  ;;  %v1025_v11 = vpop.f32.mrb[24].mxu0 }
 0x1fb   : > { %v807_v12 = vadd.f32 %v806_v10, %v1797_v1  ;;  %v1026_v13 = vadd.f32 %v1025_v11, %v1800_v5  ;;  %v808_v14 = vpop.f32.mrb[9].mxu1  ;;  %v1027_v15 = vpop.f32.mrb[25].mxu0 }
 0x1fc   : > { %v809_v16 = vadd.f32 %v808_v14, %v1803_v6  ;;  %v1028_v17 = vadd.f32 %v1027_v15, %v1806_v7  ;;  %v810_v18 = vpop.f32.mrb[10].mxu1  ;;  %v1029_v19 = vpop.f32.mrb[26].mxu0 }
 0x1fd   : > { %v1076_v22 = vmax.f32 %v807_v12, 0.0  ;;  %v1082_v23 = vmax.f32 %v1026_v13, 0.0  ;;  %v811_v24 = vadd.f32 %v810_v18, %v1797_v1  ;;  %v1030_v25 = vadd.f32 %v1029_v19, %v1800_v5  ;;  %v812_v26 = vpop.f32.mrb[11].mxu1  ;;  %v1031_v27 = vpop.f32.mrb[27].mxu0 }
 0x1fe   : > { %v1077_v28 = vmax.f32 %v809_v16, 0.0  ;;  %v1083_v29 = vmax.f32 %v1028_v17, 0.0  ;;  %v813_v30 = vadd.f32 %v812_v26, %v1803_v6  ;;  %v1032_v31 = vadd.f32 %v1031_v27, %v1806_v7 }
 0x1ff   : > { %v1111_v32 = vadd.f32 %v1110_v3, %v1076_v22  ;;  %v1189_v33 = vadd.f32 %v1188_v4, %v1082_v23  ;;  %v1084_v34 = vmax.f32 %v811_v24, 0.0  ;;  %v1090_v35 = vmax.f32 %v1030_v25, 0.0 }
 0x200   : > { %v1124_v36 = vadd.f32 %v1123_v8, %v1077_v28  ;;  %v1202_v37 = vadd.f32 %v1201_v9, %v1083_v29  ;;  %v1085_v38 = vmax.f32 %v813_v30, 0.0  ;;  %v1091_v39 = vmax.f32 %v1032_v31, 0.0 }
 0x201   : > { %v1112_v40 = vadd.f32 %v1111_v32, %v1084_v34  ;;  %v1190_v41 = vadd.f32 %v1189_v33, %v1090_v35 }
 0x202   : > { %v1125_v42 = vadd.f32 %v1124_v36, %v1085_v38  ;;  %v1203_v43 = vadd.f32 %v1202_v37, %v1091_v39  ;;  %v816_v44 = vpop.f32.mrb[12].mxu1  ;;  %v1035_v45 = vpop.f32.mrb[28].mxu0 }
 0x203   : > { %v817_v46 = vadd.f32 %v816_v44, %v1797_v1  ;;  %v1036_v47 = vadd.f32 %v1035_v45, %v1800_v5  ;;  %v818_v48 = vpop.f32.mrb[13].mxu1  ;;  %v1037_v49 = vpop.f32.mrb[29].mxu0 }
 0x204   : > { %v819_v50 = vadd.f32 %v818_v48, %v1803_v6  ;;  %v1038_v51 = vadd.f32 %v1037_v49, %v1806_v7  ;;  %v820_v52 = vpop.f32.mrb[14].mxu1  ;;  %v1039_v53 = vpop.f32.mrb[30].mxu0 }
 0x205   : > { %v1092_v56 = vmax.f32 %v817_v46, 0.0  ;;  %v1098_v57 = vmax.f32 %v1036_v47, 0.0  ;;  %v821_v58 = vadd.f32 %v820_v52, %v1797_v1  ;;  %v1040_v59 = vadd.f32 %v1039_v53, %v1800_v5  ;;  %v822_v60 = vpop.f32.mrb[15].mxu1  ;;  %v1041_v61 = vpop.f32.mrb[31].mxu0 }
 0x206   : > { %v1093_v63 = vmax.f32 %v819_v50, 0.0  ;;  %v1099_v0 = vmax.f32 %v1038_v51, 0.0  ;;  %v823_v3 = vadd.f32 %v822_v60, %v1803_v6  ;;  %v1042_v4 = vadd.f32 %v1041_v61, %v1806_v7 }
 0x207   : > { %v1113_v8 = vadd.f32 %v1112_v40, %v1092_v56  ;;  %v1191_v9 = vadd.f32 %v1190_v41, %v1098_v57  ;;  %v1100_v10 = vmax.f32 %v821_v58, 0.0  ;;  %v1106_v11 = vmax.f32 %v1040_v59, 0.0 }
 0x208   : > { %v1126_v12 = vadd.f32 %v1125_v42, %v1093_v63  ;;  %v1204_v13 = vadd.f32 %v1203_v43, %v1099_v0  ;;  %v1101_v14 = vmax.f32 %v823_v3, 0.0  ;;  %v1107_v15 = vmax.f32 %v1042_v4, 0.0 }
 0x209   : > { %v1114_v16 = vadd.f32 %v1113_v8, %v1100_v10  ;;  %v1192_v1 = vadd.f32 %v1191_v9, %v1106_v11 }
 0x20a   : > { %v1127_v17 = vadd.f32 %v1126_v12, %v1101_v14  ;;  %v1205_v5 = vadd.f32 %v1204_v13, %v1107_v15  ;;  %v859_v18 = vpop.f32.mrb[16].mxu1 }
 0x20b   : > { %v1115_v19 = vrot.slane %v1114_v16, 4  ;;  %v1193_v20 = vrot.slane %v1192_v1, 4  ;;  %v860_v21 = vadd.f32 %v859_v18, %v1839_v54  ;;  %v861_v6 = vpop.f32.mrb[17].mxu1 }
 0x20c   : > { %v1128_v22 = vrot.slane %v1127_v17, 4  ;;  %v1206_v7 = vrot.slane %v1205_v5, 4  ;;  %v862_v23 = vadd.f32 %v861_v6, %v1842_v55  ;;  %v863_v24 = vpop.f32.mrb[18].mxu1 }
 0x20d   : > { %v1116_v25 = vadd.f32 %v1115_v19, %v1114_v16  ;;  %v1194_v26 = vadd.f32 %v1193_v20, %v1192_v1  ;;  %v864_v27 = vadd.f32 %v863_v24, %v1839_v54  ;;  %v865_v28 = vpop.f32.mrb[19].mxu1  ;;  %v1046_v34 = vmax.f32 %v860_v21, 0.0 }
 0x20e   : > { %v1129_v29 = vadd.f32 %v1128_v22, %v1127_v17  ;;  %v1207_v30 = vadd.f32 %v1206_v7, %v1205_v5  ;;  %v866_v31 = vadd.f32 %v865_v28, %v1842_v55  ;;  %v1047_v38 = vmax.f32 %v862_v23, 0.0 }
 0x20f   : > { %v1117_v32 = vrot.slane %v1116_v25, 2  ;;  %v1195_v33 = vrot.slane %v1194_v26, 2  ;;  %v1054_v35 = vmax.f32 %v864_v27, 0.0 }
 0x210   : > { %v1130_v36 = vrot.slane %v1129_v29, 2  ;;  %v1208_v37 = vrot.slane %v1207_v30, 2  ;;  %v1055_v39 = vmax.f32 %v866_v31, 0.0  ;;  %v557_v31 = vsub.s32 4, %v1785_v62 }
 0x211   : > { %v1118_v40 = vadd.f32 %v1117_v32, %v1116_v25  ;;  %v1196_v41 = vadd.f32 %v1195_v33, %v1194_v26  ;;  %v1134_v42 = vadd.f32 %v1054_v35, %v1046_v34  ;;  %v561_v34 = vsub.s32 5, %v1785_v62 }
 0x212   : > { %v1131_v43 = vadd.f32 %v1130_v36, %v1129_v29  ;;  %v1209_v44 = vadd.f32 %v1208_v37, %v1207_v30  ;;  %v1147_v45 = vadd.f32 %v1055_v39, %v1047_v38  ;;  %v869_v46 = vpop.f32.mrb[20].mxu1 }
 0x213   : > { %v1119_v47 = vrot.slane %v1118_v40, 1  ;;  %v1197_v48 = vrot.slane %v1196_v41, 1  ;;  %v870_v49 = vadd.f32 %v869_v46, %v1839_v54  ;;  %v871_v50 = vpop.f32.mrb[21].mxu1 }
 0x214   : > { %v1132_v51 = vrot.slane %v1131_v43, 1  ;;  %v1210_v52 = vrot.slane %v1209_v44, 1  ;;  %v872_v53 = vadd.f32 %v871_v50, %v1842_v55  ;;  %v873_v56 = vpop.f32.mrb[22].mxu1 }
 0x215   : > { %v1854_v57 = vadd.f32 %v1119_v47, %v1118_v40  ;;  %v1856_v58 = vadd.f32 %v1197_v48, %v1196_v41  ;;  %v1062_v59 = vmax.f32 %v870_v49, 0.0  ;;  %v874_v60 = vadd.f32 %v873_v56, %v1839_v54  ;;  %v875_v61 = vpop.f32.mrb[23].mxu1 }
 0x216   : > { %v1859_v63 = vadd.f32 %v1132_v51, %v1131_v43  ;;  %v1861_v0 = vadd.f32 %v1210_v52, %v1209_v44  ;;  %v1063_v3 = vmax.f32 %v872_v53, 0.0  ;;  %v876_v4 = vadd.f32 %v875_v61, %v1842_v55 }
 0x217   : > { %v1135_v8 = vadd.f32 %v1134_v42, %v1062_v59  ;;  %v1070_v9 = vmax.f32 %v874_v60, 0.0  ;;  %v1879_v42 = vrot.slane %v1792_v2, %v557_v31  ;;  %v1511_v60 = vmov 1966171168  }
 0x218   : > { %v1221_v10 = vcombine.low %v1854_v57, %v1859_v63  ;;  %v1224_v11 = vcombine.low %v1856_v58, %v1861_v0  ;;  %v1148_v12 = vadd.f32 %v1147_v45, %v1063_v3  ;;  %v1071_v13 = vmax.f32 %v876_v4, 0.0 }
 0x219   : > { %v1136_v14 = vadd.f32 %v1135_v8, %v1070_v9  ;;  %v1882_v45 = vrot.slane %v1792_v2, %v561_v34  ;;  %v1226_v61 = vunpack.c.l.s4 %v1511_v60 }
 0x21a   : > { %v1149_v15 = vadd.f32 %v1148_v12, %v1071_v13  ;;  %v879_v16 = vpop.f32.mrb[24].mxu1 }
 0x21b   : > { %v880_v1 = vadd.f32 %v879_v16, %v1839_v54  ;;  %v881_v17 = vpop.f32.mrb[25].mxu1 }
 0x21c   : > { %v882_v5 = vadd.f32 %v881_v17, %v1842_v55  ;;  %v883_v18 = vpop.f32.mrb[26].mxu1 }
 0x21d   : > { %v1078_v19 = vmax.f32 %v880_v1, 0.0  ;;  %v884_v20 = vadd.f32 %v883_v18, %v1839_v54  ;;  %v885_v21 = vpop.f32.mrb[27].mxu1  ;;  %v1227_v1 = vunpack.c.0.s8 %v1226_v61 }
 0x21e   : > { %v1079_v6 = vmax.f32 %v882_v5, 0.0  ;;  %v886_v22 = vadd.f32 %v885_v21, %v1842_v55 }
 0x21f   : > { %v1137_v7 = vadd.f32 %v1136_v14, %v1078_v19  ;;  %v1086_v23 = vmax.f32 %v884_v20, 0.0 }
 0x220   : > { %v1150_v24 = vadd.f32 %v1149_v15, %v1079_v6  ;;  %v1087_v25 = vmax.f32 %v886_v22, 0.0 }
 0x221   : > { %v1138_v26 = vadd.f32 %v1137_v7, %v1086_v23 }
 0x222   : > { %v1151_v27 = vadd.f32 %v1150_v24, %v1087_v25  ;;  %v889_v28 = vpop.f32.mrb[28].mxu1 }
 0x223   : > { %v890_v29 = vadd.f32 %v889_v28, %v1839_v54  ;;  %v891_v30 = vpop.f32.mrb[29].mxu1 }
 0x224   : > { %v892_v32 = vadd.f32 %v891_v30, %v1842_v55  ;;  %v893_v33 = vpop.f32.mrb[30].mxu1 }
 0x225   : > { %v1094_v35 = vmax.f32 %v890_v29, 0.0  ;;  %v894_v36 = vadd.f32 %v893_v33, %v1839_v54  ;;  %v895_v37 = vpop.f32.mrb[31].mxu1 }
 0x226   : > { %v1095_v38 = vmax.f32 %v892_v32, 0.0  ;;  %v896_v39 = vadd.f32 %v895_v37, %v1842_v55 }
 0x227   : > { %v1139_v40 = vadd.f32 %v1138_v26, %v1094_v35  ;;  %v1102_v41 = vmax.f32 %v894_v36, 0.0 }
 0x228   : > { %v1152_v43 = vadd.f32 %v1151_v27, %v1095_v38  ;;  %v1103_v44 = vmax.f32 %v896_v39, 0.0  ;;  %v1892_v27 = vsub.s32 %v1227_v1, %v1785_v62 }
 0x229   : > { %v1140_v46 = vadd.f32 %v1139_v40, %v1102_v41 }
 0x22a   : > { %v1153_v47 = vadd.f32 %v1152_v43, %v1103_v44  ;;  %v932_v48 = vpop.f32.mrb[32].mxu1  ;;  %v1231_v37 = vrot.slane %v1221_v10, %v1892_v27 }
 0x22b   : > { %v1141_v49 = vrot.slane %v1140_v46, 4  ;;  %v933_v54 = vadd.f32 %v932_v48, %v1879_v42  ;;  %v934_v50 = vpop.f32.mrb[33].mxu1 }
 0x22c   : > { %v1154_v51 = vrot.slane %v1153_v47, 4  ;;  %v935_v55 = vadd.f32 %v934_v50, %v1882_v45  ;;  %v936_v52 = vpop.f32.mrb[34].mxu1 }
 0x22d   : > { %v1142_v53 = vadd.f32 %v1141_v49, %v1140_v46  ;;  %v937_v56 = vadd.f32 %v936_v52, %v1879_v42  ;;  %v938_v59 = vpop.f32.mrb[35].mxu1  ;;  %v1048_v8 = vmax.f32 %v933_v54, 0.0 }
 0x22e   : > { %v1155_v3 = vadd.f32 %v1154_v51, %v1153_v47  ;;  %v939_v2 = vadd.f32 %v938_v59, %v1882_v45  ;;  %v1049_v13 = vmax.f32 %v935_v55, 0.0 }
 0x22f   : > { %v1143_v4 = vrot.slane %v1142_v53, 2  ;;  %v1056_v9 = vmax.f32 %v937_v56, 0.0 }
 0x230   : > { %v1156_v12 = vrot.slane %v1155_v3, 2  ;;  %v1057_v14 = vmax.f32 %v939_v2, 0.0 }
 0x231   : > { %v1144_v15 = vadd.f32 %v1143_v4, %v1142_v53  ;;  %v1160_v16 = vadd.f32 %v1056_v9, %v1048_v8 }
 0x232   : > { %v1157_v17 = vadd.f32 %v1156_v12, %v1155_v3  ;;  %v1173_v5 = vadd.f32 %v1057_v14, %v1049_v13  ;;  %v942_v18 = vpop.f32.mrb[36].mxu1 }
 0x233   : > { %v1145_v19 = vrot.slane %v1144_v15, 1  ;;  %v943_v20 = vadd.f32 %v942_v18, %v1879_v42  ;;  %v944_v21 = vpop.f32.mrb[37].mxu1 }
 0x234   : > { %v1158_v6 = vrot.slane %v1157_v17, 1  ;;  %v945_v22 = vadd.f32 %v944_v21, %v1882_v45  ;;  %v946_v7 = vpop.f32.mrb[38].mxu1 }
 0x235   : > { %v1146_v23 = vadd.f32 %v1145_v19, %v1144_v15  ;;  %v1064_v24 = vmax.f32 %v943_v20, 0.0  ;;  %v947_v25 = vadd.f32 %v946_v7, %v1879_v42  ;;  %v948_v26 = vpop.f32.mrb[39].mxu1 }
 0x236   : > { %v1159_v28 = vadd.f32 %v1158_v6, %v1157_v17  ;;  %v1065_v29 = vmax.f32 %v945_v22, 0.0  ;;  %v949_v30 = vadd.f32 %v948_v26, %v1882_v45 }
 0x237   : > { %v1161_v31 = vadd.f32 %v1160_v16, %v1064_v24  ;;  %v1072_v32 = vmax.f32 %v947_v25, 0.0  ;;  %v1252_v25 = vrot.slane %v1224_v11, %v1892_v27 }
 0x238   : > { %v1222_v33 = vcombine.low %v1146_v23, %v1159_v28  ;;  %v1174_v34 = vadd.f32 %v1173_v5, %v1065_v29  ;;  %v1073_v35 = vmax.f32 %v949_v30, 0.0 }
 0x239   : > { %v1162_v36 = vadd.f32 %v1161_v31, %v1072_v32 }
 0x23a   : > { %v1238_v38 = vrot.slane %v1222_v33, %v1892_v27  ;;  %v1175_v39 = vadd.f32 %v1174_v34, %v1073_v35  ;;  %v952_v62 = vpop.f32.mrb[40].mxu1 }
 0x23b   : > { %v953_v40 = vadd.f32 %v952_v62, %v1879_v42  ;;  %v954_v41 = vpop.f32.mrb[41].mxu1 }
 0x23c   : > { %v1253_v43 = vcombine.low %v1231_v37, %v1238_v38  ;;  %v955_v44 = vadd.f32 %v954_v41, %v1882_v45  ;;  %v956_v46 = vpop.f32.mrb[42].mxu1 }
 0x23d   : > { %v1080_v47 = vmax.f32 %v953_v40, 0.0  ;;  %v957_v48 = vadd.f32 %v956_v46, %v1879_v42  ;;  %v958_v49 = vpop.f32.mrb[43].mxu1 }
 0x23e   : > { %v1081_v54 = vmax.f32 %v955_v44, 0.0  ;;  %v959_v50 = vadd.f32 %v958_v49, %v1882_v45  ;;  %v1261_v29 = vrot.slane %v1253_v43, %v1892_v27 }
 0x23f   : > { %v1163_v57 = vadd.f32 %v1162_v36, %v1080_v47  ;;  %v1088_v63 = vmax.f32 %v957_v48, 0.0 }
 0x240   : > { %v1176_v10 = vadd.f32 %v1175_v39, %v1081_v54  ;;  %v1089_v51 = vmax.f32 %v959_v50, 0.0 }
 0x241   : > { %v1164_v55 = vadd.f32 %v1163_v57, %v1088_v63 }
 0x242   : > { %v1177_v52 = vadd.f32 %v1176_v10, %v1089_v51  ;;  %v962_v53 = vpop.f32.mrb[44].mxu1 }
 0x243   : > { %v963_v56 = vadd.f32 %v962_v53, %v1879_v42  ;;  %v964_v59 = vpop.f32.mrb[45].mxu1 }
 0x244   : > { %v965_v60 = vadd.f32 %v964_v59, %v1882_v45  ;;  %v966_v61 = vpop.f32.mrb[46].mxu1 }
 0x245   : > { %v1096_v3 = vmax.f32 %v963_v56, 0.0  ;;  %v967_v2 = vadd.f32 %v966_v61, %v1879_v42  ;;  %v968_v4 = vpop.f32.mrb[47].mxu1 }
 0x246   : > { %v1097_v8 = vmax.f32 %v965_v60, 0.0  ;;  %v969_v9 = vadd.f32 %v968_v4, %v1882_v45 }
 0x247   : > { %v1165_v12 = vadd.f32 %v1164_v55, %v1096_v3  ;;  %v1104_v13 = vmax.f32 %v967_v2, 0.0 }
 0x248   : > { %v1178_v14 = vadd.f32 %v1177_v52, %v1097_v8  ;;  %v1105_v15 = vmax.f32 %v969_v9, 0.0 }
 0x249   : > { %v1166_v16 = vadd.f32 %v1165_v12, %v1104_v13 }
 0x24a   : > { %v1179_v1 = vadd.f32 %v1178_v14, %v1105_v15 }
 0x24b   : > { %v1167_v17 = vrot.slane %v1166_v16, 4 }
 0x24c   : > { %v1180_v5 = vrot.slane %v1179_v1, 4 }
 0x24d   : > { %v1168_v18 = vadd.f32 %v1167_v17, %v1166_v16 }
 0x24e   : > { %v1181_v19 = vadd.f32 %v1180_v5, %v1179_v1 }
 0x24f   : > { %v1169_v20 = vrot.slane %v1168_v18, 2 }
 0x250   : > { %v1182_v21 = vrot.slane %v1181_v19, 2 }
 0x251   : > { %v1170_v6 = vadd.f32 %v1169_v20, %v1168_v18 }
 0x252   : > { %v1183_v22 = vadd.f32 %v1182_v21, %v1181_v19 }
 0x253   : > { %v1171_v42 = vrot.slane %v1170_v6, 1 }
 0x254   : > { %v1184_v7 = vrot.slane %v1183_v22, 1 }
 0x255   : > { %v1172_v23 = vadd.f32 %v1171_v42, %v1170_v6 }
 0x256   : > { %v1185_v24 = vadd.f32 %v1184_v7, %v1183_v22 }
 0x258   : > { %v1223_v45 = vcombine.low %v1172_v23, %v1185_v24 }
 0x25a   : > { %v1245_v26 = vrot.slane %v1223_v45, %v1892_v27 }
 0x25c   : > { %v1254_v28 = vcombine.low %v1245_v26, %v1252_v25 }
 0x25e   : > { %v1268_v30 = vrot.slane %v1254_v28, %v1892_v27 }
 0x260   : > { %v1269_v31 = vcombine.low %v1261_v29, %v1268_v30 }
 0x262   : > { %v1277_v32 = vmul.f32 0.015625, %v1269_v31 }
 0x264   : > { %1278 = vst [vmem:[%s253_s15] sm:$0xff] %v1277_v32 }
 0x265 PF: > { %s15_s20 = sadd.s32 1, %s1508_s20   ;;  %s1934_s18 = smov %s1504_s19 }
 0x266   : > { %p12_p5 = scmp.ge.s32.totalorder %s15_s20, 4   ;;  %s1935_s19 = smov %s1937_s21 }
 0x268   :  { %14 = sbr.rel (!%p12_p5) target bundleno = 2 (0x2), region = 78 }

// kernel: forward.3
= control target key start
LH: loop header
LB: loop body
LE: loop exit
PB: predicated region body
PF: predicated region fallthrough
CT: control target
= control target key end

     0   :  { %12 = vsyncpa [#allocation4], 0  ;;  %s3564_s24 = smov 0   ;;  %s4281_s0 = inlined_call_operand.vmem [shape: bf16[1,2048], index: 0, kind: input, shape index: {}]   ;;  %s4282_s1 = inlined_call_operand.vmem [shape: bf16[2048,512], index: 1, kind: input, shape index: {}]   ;;  %s4283_s2 = inlined_call_operand.vmem [shape: f32[1,512], index: 2, kind: input, shape index: {}]   ;;  %s4284_s3 = inlined_call_operand.vmem [shape: bf16[512,512], index: 3, kind: input, shape index: {}]   ;;  %s4285_s4 = inlined_call_operand.vmem [shape: f32[1,512], index: 4, kind: input, shape index: {}]   ;;  %s4286_s5 = inlined_call_operand.vmem [shape: bf16[512,7], index: 5, kind: input, shape index: {}]   ;;  %s4287_s6 = inlined_call_operand.vmem [shape: f32[1,7], index: 6, kind: input, shape index: {}]   ;;  %s4288_s7 = inlined_call_operand.hbm [shape: f32[1,7], index: 7, kind: output, shape index: {}]  }
   0x1 LB: > { %s3570_s25 = sadd.s32 4294967295, %s3519_s24   ;;  %p2685_p0 = scmp.ge.s32.totalorder %s3519_s24, 1  ;;  %s3519_s24 = sphi %s3564_s24, %s18_s24  }
   0x2   : > { %p245_p1 = scmp.lt.s32.totalorder %s3519_s24, 5 }
   0x4   : > { %p246_p2 = pnand %p2685_p0, %p245_p1 }
   0x5   : > { %s2686_s26 = sshll.u32 (!%p246_p2), %s3570_s25, 2  ;;  %s2687_s27 = sshll.u32 (!%p246_p2), %s3570_s25, 6 }
   0x6   : > { %249 = sbr.rel (%p246_p2) target bundleno = 961 (0x3c1), region = 48  ;;  %p278_p3 = scmp.lt.s32.totalorder (!%p246_p2), %s2686_s26, 15 }
   0x7   : > { %p283_p4 = scmp.lt.s32.totalorder (!%p246_p2), %s2687_s27, 255  ;;  %p2690_p5 = scmp.ne.s32.totalorder (!%p246_p2), %s3570_s25, 0 }
   0xd   : > { %s4290_s26 = smov (!%p278_p3, %s2686_s26), 15  ;;  %s4292_s27 = smov (!%p283_p4, %s2687_s27), 255 }
   0xe   : > { %s280_s30 = scalar_lea.vmem %s4281_s0, %s4290_s26  ;;  %s2985_s8 = sshll.u32 %s4292_s27, 4  ;;  %v294_v0 = vlaneseq (!%p2690_p5)  ;;  %v3521_v1 = vmov (!%p2690_p5), 0.0  }
   0xf   : > { %s3585_s11 = scalar_lea.vmem %s4282_s1, %s2985_s8  ;;  %293 = sbr.rel (%p2690_p5) target bundleno = 22 (0x16), region = 52 }
  0x10   : > { %vm296_vm0 = vcmp.lt.s32.totalorder (!%p2690_p5), %v294_v0, 512 }
  0x11   : > { %298 = vst.msk [vmem:[#allocation2] sm:$0xf] (!%p2690_p5), %vm296_vm0, %v3521_v1 }
  0x16 PF: > { %v3067_v2 = vld [vmem:[%s3585_s11 + $0x4] ss:$16 sps:$4 sm:$0xff]   ;;  %v3069_v3 = vld [vmem:[%s3585_s11 + $0xc] ss:$16 sps:$4 sm:$0xff]   ;;  %v3071_v4 = vld [vmem:[%s3585_s11] ss:$16 sps:$4 sm:$0xff]   ;;  %v441_v42 = vlaneseq }
  0x17   : > { %1098 = vmatprep.subr.bf16.mxu0 %v3067_v2  ;;  %v3072_v5 = vld [vmem:[%s3585_s11 + $0x8] ss:$16 sps:$4 sm:$0xff]   ;;  %1180 = vmatprep.subr.bf16.mxu1 %v3069_v3  ;;  %v3073_v6 = vld [vmem:[%s3585_s11 + $0x24] ss:$16 sps:$4 sm:$0xff]   ;;  %v3075_v7 = vld [vmem:[%s3585_s11 + $0x2c] ss:$16 sps:$4 sm:$0xff]  }
  0x18   : > { %1099 = vmatpush1.bf16.msra.mxu0 %v3071_v4  ;;  %1181 = vmatpush1.bf16.msra.mxu1 %v3072_v5  ;;  %v3077_v8 = vld [vmem:[%s3585_s11 + $0x20] ss:$16 sps:$4 sm:$0xff]   ;;  %v3078_v9 = vld [vmem:[%s3585_s11 + $0x28] ss:$16 sps:$4 sm:$0xff]   ;;  %v3079_v10 = vld [vmem:[%s3585_s11 + $0x44] ss:$16 sps:$4 sm:$0xff]  }
  0x19   : > { %1100 = vmatprep.subr.bf16.mxu0 %v3073_v6  ;;  %1182 = vmatprep.subr.bf16.mxu1 %v3075_v7  ;;  %v3081_v11 = vld [vmem:[%s3585_s11 + $0x4c] ss:$16 sps:$4 sm:$0xff]   ;;  %v3083_v12 = vld [vmem:[%s3585_s11 + $0x40] ss:$16 sps:$4 sm:$0xff]   ;;  %v3084_v13 = vld [vmem:[%s3585_s11 + $0x48] ss:$16 sps:$4 sm:$0xff]  }
  0x1a   : > { %v3085_v14 = vld [vmem:[%s3585_s11 + $0x64] ss:$16 sps:$4 sm:$0xff]   ;;  %v3087_v15 = vld [vmem:[%s3585_s11 + $0x6c] ss:$16 sps:$4 sm:$0xff]   ;;  %v3089_v16 = vld [vmem:[%s3585_s11 + $0x60] ss:$16 sps:$4 sm:$0xff]  }
  0x1b   : > { %v3090_v17 = vld [vmem:[%s3585_s11 + $0x68] ss:$16 sps:$4 sm:$0xff]   ;;  %v3091_v18 = vld [vmem:[%s3585_s11 + $0x84] ss:$16 sps:$4 sm:$0xff]   ;;  %v3093_v19 = vld [vmem:[%s3585_s11 + $0x8c] ss:$16 sps:$4 sm:$0xff]  }
  0x1c   : > { %1101 = vmatpush1.bf16.msra.mxu0 %v3077_v8  ;;  %1183 = vmatpush1.bf16.msra.mxu1 %v3078_v9  ;;  %v3095_v20 = vld [vmem:[%s3585_s11 + $0x80] ss:$16 sps:$4 sm:$0xff]   ;;  %v3096_v21 = vld [vmem:[%s3585_s11 + $0x88] ss:$16 sps:$4 sm:$0xff]   ;;  %v3097_v22 = vld [vmem:[%s3585_s11 + $0xa4] ss:$16 sps:$4 sm:$0xff]  }
  0x1d   : > { %1102 = vmatprep.subr.bf16.mxu0 %v3079_v10  ;;  %1184 = vmatprep.subr.bf16.mxu1 %v3081_v11  ;;  %v3099_v23 = vld [vmem:[%s3585_s11 + $0xac] ss:$16 sps:$4 sm:$0xff]   ;;  %v3101_v24 = vld [vmem:[%s3585_s11 + $0xa0] ss:$16 sps:$4 sm:$0xff]   ;;  %v3102_v25 = vld [vmem:[%s3585_s11 + $0xa8] ss:$16 sps:$4 sm:$0xff]  }
  0x1e   : > { %v3103_v26 = vld [vmem:[%s3585_s11 + $0xc4] ss:$16 sps:$4 sm:$0xff]   ;;  %v3105_v27 = vld [vmem:[%s3585_s11 + $0xcc] ss:$16 sps:$4 sm:$0xff]   ;;  %v3107_v28 = vld [vmem:[%s3585_s11 + $0xc0] ss:$16 sps:$4 sm:$0xff]  }
  0x1f   : > { %v3108_v29 = vld [vmem:[%s3585_s11 + $0xc8] ss:$16 sps:$4 sm:$0xff]   ;;  %v3109_v30 = vld [vmem:[%s3585_s11 + $0xe4] ss:$16 sps:$4 sm:$0xff]   ;;  %v3111_v31 = vld [vmem:[%s3585_s11 + $0xec] ss:$16 sps:$4 sm:$0xff]  }
  0x20   : > { %1103 = vmatpush1.bf16.msra.mxu0 %v3083_v12  ;;  %1185 = vmatpush1.bf16.msra.mxu1 %v3084_v13  ;;  %v3113_v32 = vld [vmem:[%s3585_s11 + $0xe0] ss:$16 sps:$4 sm:$0xff]   ;;  %v3114_v33 = vld [vmem:[%s3585_s11 + $0xe8] ss:$16 sps:$4 sm:$0xff]   ;;  %v3115_v34 = vld [vmem:[%s3585_s11 + $0x104] ss:$16 sps:$4 sm:$0xff]  }
  0x21   : > { %1104 = vmatprep.subr.bf16.mxu0 %v3085_v14  ;;  %1186 = vmatprep.subr.bf16.mxu1 %v3087_v15  ;;  %v3117_v35 = vld [vmem:[%s3585_s11 + $0x10c] ss:$16 sps:$4 sm:$0xff]   ;;  %v3119_v36 = vld [vmem:[%s3585_s11 + $0x100] ss:$16 sps:$4 sm:$0xff]   ;;  %v3120_v37 = vld [vmem:[%s3585_s11 + $0x108] ss:$16 sps:$4 sm:$0xff]  }
  0x22   : > { %v3121_v38 = vld [vmem:[%s3585_s11 + $0x124] ss:$16 sps:$4 sm:$0xff]   ;;  %v3123_v39 = vld [vmem:[%s3585_s11 + $0x12c] ss:$16 sps:$4 sm:$0xff]   ;;  %v3522_v40 = vmov 1966171168  }
  0x23   : > { %v439_v41 = vunpack.c.l.s4 %v3522_v40  ;;  %v3125_v43 = vld [vmem:[%s3585_s11 + $0x120] ss:$16 sps:$4 sm:$0xff]   ;;  %v3126_v44 = vld [vmem:[%s3585_s11 + $0x128] ss:$16 sps:$4 sm:$0xff]   ;;  %v3127_v45 = vld [vmem:[%s3585_s11 + $0x144] ss:$16 sps:$4 sm:$0xff]  }
  0x24   : > { %1105 = vmatpush1.bf16.msra.mxu0 %v3089_v16  ;;  %1187 = vmatpush1.bf16.msra.mxu1 %v3090_v17  ;;  %v3129_v46 = vld [vmem:[%s3585_s11 + $0x14c] ss:$16 sps:$4 sm:$0xff]   ;;  %v3631_v48 = vshrl.u32 %v441_v42, 7  ;;  %v3131_v49 = vld [vmem:[%s3585_s11 + $0x140] ss:$16 sps:$4 sm:$0xff]   ;;  %vm1294_vm1 = vcmp.lt.s32.totalorder %v441_v42, 512 }
  0x25   : > { %1106 = vmatprep.subr.bf16.mxu0 %v3091_v18  ;;  %1188 = vmatprep.subr.bf16.mxu1 %v3093_v19  ;;  %v440_v47 = vunpack.c.0.s8 %v439_v41  ;;  %v3132_v50 = vld [vmem:[%s3585_s11 + $0x148] ss:$16 sps:$4 sm:$0xff]   ;;  %v3133_v51 = vld [vmem:[%s3585_s11 + $0x164] ss:$16 sps:$4 sm:$0xff]   ;;  %v3135_v52 = vld [vmem:[%s3585_s11 + $0x16c] ss:$16 sps:$4 sm:$0xff]  }
  0x26   : > { %v2691_v54 = vld.sshfl [vmem:[%s280_s30] sm:$0x33 pattern:$0x75316420]  ;;  %v3138_v56 = vld [vmem:[%s3585_s11 + $0x168] ss:$16 sps:$4 sm:$0xff]  }
  0x27   : > { %v3638_v53 = vsub.s32 %v440_v47, %v3631_v48  ;;  %v3137_v55 = vld [vmem:[%s3585_s11 + $0x160] ss:$16 sps:$4 sm:$0xff]   ;;  %v437_v57 = vcombine.high %v2691_v54, %v2691_v54  ;;  %v3139_v58 = vld [vmem:[%s3585_s11 + $0x184] ss:$16 sps:$4 sm:$0xff]   ;;  %v3141_v59 = vld [vmem:[%s3585_s11 + $0x18c] ss:$16 sps:$4 sm:$0xff]  }
  0x28   : > { %1107 = vmatpush1.bf16.msra.mxu0 %v3095_v20  ;;  %1189 = vmatpush1.bf16.msra.mxu1 %v3096_v21  ;;  %v3143_v61 = vld [vmem:[%s3585_s11 + $0x180] ss:$16 sps:$4 sm:$0xff]   ;;  %v3144_v62 = vld [vmem:[%s3585_s11 + $0x188] ss:$16 sps:$4 sm:$0xff]   ;;  %v3145_v63 = vld [vmem:[%s3585_s11 + $0x1a4] ss:$16 sps:$4 sm:$0xff]  }
  0x29   : > { %1108 = vmatprep.subr.bf16.mxu0 %v3097_v22  ;;  %1190 = vmatprep.subr.bf16.mxu1 %v3099_v23  ;;  %v451_v60 = vrot.slane %v437_v57, %v3638_v53  ;;  %v3147_v0 = vld [vmem:[%s3585_s11 + $0x1ac] ss:$16 sps:$4 sm:$0xff]   ;;  %v3149_v1 = vld [vmem:[%s3585_s11 + $0x1a0] ss:$16 sps:$4 sm:$0xff]   ;;  %v3150_v2 = vld [vmem:[%s3585_s11 + $0x1a8] ss:$16 sps:$4 sm:$0xff]   ;;  %v3668_v14 = vrot.slane %v2691_v54, %v3638_v53 }
  0x2a   : > { %v3151_v3 = vld [vmem:[%s3585_s11 + $0x1c4] ss:$16 sps:$4 sm:$0xff]   ;;  %v3153_v4 = vld [vmem:[%s3585_s11 + $0x1cc] ss:$16 sps:$4 sm:$0xff]   ;;  %v3155_v5 = vld [vmem:[%s3585_s11 + $0x1c0] ss:$16 sps:$4 sm:$0xff]  }
  0x2b   : > { %1130 = vmatprep.mubr.bf16.mxu0 %v451_v60  ;;  %1212 = vmatprep.mubr.bf16.mxu1 %v451_v60  ;;  %v3156_v6 = vld [vmem:[%s3585_s11 + $0x1c8] ss:$16 sps:$4 sm:$0xff]   ;;  %v3157_v7 = vld [vmem:[%s3585_s11 + $0x1e4] ss:$16 sps:$4 sm:$0xff]   ;;  %v3159_v8 = vld [vmem:[%s3585_s11 + $0x1ec] ss:$16 sps:$4 sm:$0xff]   ;;  %v453_v18 = vcombine.high %v451_v60, %v451_v60 }
  0x2c   : > { %1109 = vmatpush1.bf16.msra.mxu0 %v3101_v24  ;;  %1191 = vmatpush1.bf16.msra.mxu1 %v3102_v25  ;;  %v3161_v9 = vld [vmem:[%s3585_s11 + $0x1e0] ss:$16 sps:$4 sm:$0xff]   ;;  %v3162_v10 = vld [vmem:[%s3585_s11 + $0x1e8] ss:$16 sps:$4 sm:$0xff]   ;;  %v3165_v11 = vld [vmem:[%s3585_s11 + $0x204] ss:$16 sps:$4 sm:$0xff]  }
  0x2d   : > { %1110 = vmatprep.subr.bf16.mxu0 %v3103_v26  ;;  %1192 = vmatprep.subr.bf16.mxu1 %v3105_v27  ;;  %v3168_v12 = vld [vmem:[%s3585_s11 + $0x20c] ss:$16 sps:$4 sm:$0xff]   ;;  %v3163_v13 = vld [vmem:[%s3585_s11 + $0x200] ss:$16 sps:$4 sm:$0xff]   ;;  %v3166_v15 = vld [vmem:[%s3585_s11 + $0x208] ss:$16 sps:$4 sm:$0xff]  }
  0x2e   : > { %v3171_v16 = vld [vmem:[%s3585_s11 + $0x224] ss:$16 sps:$4 sm:$0xff]   ;;  %v3174_v17 = vld [vmem:[%s3585_s11 + $0x22c] ss:$16 sps:$4 sm:$0xff]   ;;  %v3169_v19 = vld [vmem:[%s3585_s11 + $0x220] ss:$16 sps:$4 sm:$0xff]  }
  0x2f   : > { %v3172_v20 = vld [vmem:[%s3585_s11 + $0x228] ss:$16 sps:$4 sm:$0xff]   ;;  %v3177_v21 = vld [vmem:[%s3585_s11 + $0x244] ss:$16 sps:$4 sm:$0xff]   ;;  %v3180_v22 = vld [vmem:[%s3585_s11 + $0x24c] ss:$16 sps:$4 sm:$0xff]  }
  0x30   : > { %1111 = vmatpush1.bf16.msra.mxu0 %v3107_v28  ;;  %1193 = vmatpush1.bf16.msra.mxu1 %v3108_v29  ;;  %v3175_v23 = vld [vmem:[%s3585_s11 + $0x240] ss:$16 sps:$4 sm:$0xff]   ;;  %v3178_v24 = vld [vmem:[%s3585_s11 + $0x248] ss:$16 sps:$4 sm:$0xff]   ;;  %v3183_v25 = vld [vmem:[%s3585_s11 + $0x264] ss:$16 sps:$4 sm:$0xff]  }
  0x31   : > { %1112 = vmatprep.subr.bf16.mxu0 %v3109_v30  ;;  %1194 = vmatprep.subr.bf16.mxu1 %v3111_v31  ;;  %v3186_v26 = vld [vmem:[%s3585_s11 + $0x26c] ss:$16 sps:$4 sm:$0xff]   ;;  %v3181_v27 = vld [vmem:[%s3585_s11 + $0x260] ss:$16 sps:$4 sm:$0xff]   ;;  %v3184_v28 = vld [vmem:[%s3585_s11 + $0x268] ss:$16 sps:$4 sm:$0xff]  }
  0x32   : > { %v3189_v29 = vld [vmem:[%s3585_s11 + $0x284] ss:$16 sps:$4 sm:$0xff]   ;;  %v3192_v30 = vld [vmem:[%s3585_s11 + $0x28c] ss:$16 sps:$4 sm:$0xff]   ;;  %v3187_v31 = vld [vmem:[%s3585_s11 + $0x280] ss:$16 sps:$4 sm:$0xff]  }
  0x33   : > { %v3202_v40 = vld [vmem:[%s3585_s11 + $0x2c8] ss:$16 sps:$4 sm:$0xff]   ;;  %v3207_v41 = vld [vmem:[%s3585_s11 + $0x2e4] ss:$16 sps:$4 sm:$0xff]   ;;  %v3216_v47 = vld [vmem:[%s3585_s11 + $0x30c] ss:$16 sps:$4 sm:$0xff]  }
  0x34   : > { %1113 = vmatpush1.bf16.msra.mxu0 %v3113_v32  ;;  %1195 = vmatpush1.bf16.msra.mxu1 %v3114_v33  ;;  %v3190_v32 = vld [vmem:[%s3585_s11 + $0x288] ss:$16 sps:$4 sm:$0xff]   ;;  %v3195_v33 = vld [vmem:[%s3585_s11 + $0x2a4] ss:$16 sps:$4 sm:$0xff]   ;;  %v3217_v54 = vld [vmem:[%s3585_s11 + $0x320] ss:$16 sps:$4 sm:$0xff]  }
  0x35   : > { %1114 = vmatprep.subr.bf16.mxu0 %v3115_v34  ;;  %1196 = vmatprep.subr.bf16.mxu1 %v3117_v35  ;;  %v3198_v34 = vld [vmem:[%s3585_s11 + $0x2ac] ss:$16 sps:$4 sm:$0xff]   ;;  %v3193_v35 = vld [vmem:[%s3585_s11 + $0x2a0] ss:$16 sps:$4 sm:$0xff]   ;;  %v3231_v60 = vld [vmem:[%s3585_s11 + $0x364] ss:$16 sps:$4 sm:$0xff]  }
  0x36   : > { %v3228_v57 = vld [vmem:[%s3585_s11 + $0x34c] ss:$16 sps:$4 sm:$0xff]   ;;  %p2820_p6 = scmp.ne.s32.totalorder %s3570_s25, 3 }
  0x37   : > { %v3264_v42 = vld [vmem:[%s4284_s3 + $0x8] ss:$16 sps:$4 sm:$0xff] (!%p2820_p6)   ;;  %vm2625_vm2 = vcmask (!%p2820_p6), 49152  }
  0x38   : > { %1115 = vmatpush1.bf16.msra.mxu0 %v3119_v36  ;;  %1197 = vmatpush1.bf16.msra.mxu1 %v3120_v37  ;;  %v3196_v36 = vld [vmem:[%s3585_s11 + $0x2a8] ss:$16 sps:$4 sm:$0xff]   ;;  %v3201_v37 = vld [vmem:[%s3585_s11 + $0x2c4] ss:$16 sps:$4 sm:$0xff]  }
  0x39   : > { %1116 = vmatprep.subr.bf16.mxu0 %v3121_v38  ;;  %1198 = vmatprep.subr.bf16.mxu1 %v3123_v39  ;;  %v3204_v38 = vld [vmem:[%s3585_s11 + $0x2cc] ss:$16 sps:$4 sm:$0xff]   ;;  %v3199_v39 = vld [vmem:[%s3585_s11 + $0x2c0] ss:$16 sps:$4 sm:$0xff]  }
  0x3c   : > { %1117 = vmatpush1.bf16.msra.mxu0 %v3125_v43  ;;  %1199 = vmatpush1.bf16.msra.mxu1 %v3126_v44  ;;  %v3210_v43 = vld [vmem:[%s3585_s11 + $0x2ec] ss:$16 sps:$4 sm:$0xff]   ;;  %v3205_v44 = vld [vmem:[%s3585_s11 + $0x2e0] ss:$16 sps:$4 sm:$0xff]  }
  0x3d   : > { %1118 = vmatprep.subr.bf16.mxu0 %v3127_v45  ;;  %1200 = vmatprep.subr.bf16.mxu1 %v3129_v46  ;;  %v3208_v45 = vld [vmem:[%s3585_s11 + $0x2e8] ss:$16 sps:$4 sm:$0xff]   ;;  %v3213_v46 = vld [vmem:[%s3585_s11 + $0x304] ss:$16 sps:$4 sm:$0xff]  }
  0x40   : > { %1119 = vmatpush1.bf16.msra.mxu0 %v3131_v49  ;;  %1201 = vmatpush1.bf16.msra.mxu1 %v3132_v50  ;;  %v3211_v49 = vld [vmem:[%s3585_s11 + $0x300] ss:$16 sps:$4 sm:$0xff]   ;;  %v3214_v50 = vld [vmem:[%s3585_s11 + $0x308] ss:$16 sps:$4 sm:$0xff]  }
  0x41   : > { %1120 = vmatprep.subr.bf16.mxu0 %v3133_v51  ;;  %1202 = vmatprep.subr.bf16.mxu1 %v3135_v52  ;;  %v3219_v51 = vld [vmem:[%s3585_s11 + $0x324] ss:$16 sps:$4 sm:$0xff]   ;;  %v3222_v52 = vld [vmem:[%s3585_s11 + $0x32c] ss:$16 sps:$4 sm:$0xff]  }
  0x44   : > { %1121 = vmatpush1.bf16.msra.mxu0 %v3137_v55  ;;  %1203 = vmatpush1.bf16.msra.mxu1 %v3138_v56  ;;  %v3220_v55 = vld [vmem:[%s3585_s11 + $0x328] ss:$16 sps:$4 sm:$0xff]   ;;  %v3225_v56 = vld [vmem:[%s3585_s11 + $0x344] ss:$16 sps:$4 sm:$0xff]  }
  0x45   : > { %1122 = vmatprep.subr.bf16.mxu0 %v3139_v58  ;;  %1204 = vmatprep.subr.bf16.mxu1 %v3141_v59  ;;  %v3223_v58 = vld [vmem:[%s3585_s11 + $0x340] ss:$16 sps:$4 sm:$0xff]   ;;  %v3226_v59 = vld [vmem:[%s3585_s11 + $0x348] ss:$16 sps:$4 sm:$0xff]  }
  0x48   : > { %1123 = vmatpush1.bf16.msra.mxu0 %v3143_v61  ;;  %1205 = vmatpush1.bf16.msra.mxu1 %v3144_v62  ;;  %v3234_v61 = vld [vmem:[%s3585_s11 + $0x36c] ss:$16 sps:$4 sm:$0xff]   ;;  %v3229_v62 = vld [vmem:[%s3585_s11 + $0x360] ss:$16 sps:$4 sm:$0xff]  }
  0x49   : > { %1124 = vmatprep.subr.bf16.mxu0 %v3145_v63  ;;  %1206 = vmatprep.subr.bf16.mxu1 %v3147_v0  ;;  %v3232_v63 = vld [vmem:[%s3585_s11 + $0x368] ss:$16 sps:$4 sm:$0xff]   ;;  %v3237_v0 = vld [vmem:[%s3585_s11 + $0x384] ss:$16 sps:$4 sm:$0xff]  }
  0x4c   : > { %1125 = vmatpush1.bf16.msra.mxu0 %v3149_v1  ;;  %1207 = vmatpush1.bf16.msra.mxu1 %v3150_v2  ;;  %v3240_v1 = vld [vmem:[%s3585_s11 + $0x38c] ss:$16 sps:$4 sm:$0xff]   ;;  %v3235_v2 = vld [vmem:[%s3585_s11 + $0x380] ss:$16 sps:$4 sm:$0xff]  }
  0x4d   : > { %1126 = vmatprep.subr.bf16.mxu0 %v3151_v3  ;;  %1208 = vmatprep.subr.bf16.mxu1 %v3153_v4  ;;  %v3238_v3 = vld [vmem:[%s3585_s11 + $0x388] ss:$16 sps:$4 sm:$0xff]   ;;  %v3243_v4 = vld [vmem:[%s3585_s11 + $0x3a4] ss:$16 sps:$4 sm:$0xff]  }
  0x50   : > { %1127 = vmatpush1.bf16.msra.mxu0 %v3155_v5  ;;  %1209 = vmatpush1.bf16.msra.mxu1 %v3156_v6  ;;  %v3246_v5 = vld [vmem:[%s3585_s11 + $0x3ac] ss:$16 sps:$4 sm:$0xff]   ;;  %v3241_v6 = vld [vmem:[%s3585_s11 + $0x3a0] ss:$16 sps:$4 sm:$0xff]  }
  0x51   : > { %1128 = vmatprep.subr.bf16.mxu0 %v3157_v7  ;;  %1210 = vmatprep.subr.bf16.mxu1 %v3159_v8  ;;  %v3244_v7 = vld [vmem:[%s3585_s11 + $0x3a8] ss:$16 sps:$4 sm:$0xff]   ;;  %v3249_v8 = vld [vmem:[%s3585_s11 + $0x3c4] ss:$16 sps:$4 sm:$0xff]  }
  0x54   : > { %1129 = vmatpush1.bf16.msra.mxu0 %v3161_v9  ;;  %1211 = vmatpush1.bf16.msra.mxu1 %v3162_v10  ;;  %v3252_v9 = vld [vmem:[%s3585_s11 + $0x3cc] ss:$16 sps:$4 sm:$0xff]   ;;  %v3247_v10 = vld [vmem:[%s3585_s11 + $0x3c0] ss:$16 sps:$4 sm:$0xff]  }
  0x55   : > { %1139 = vmatprep.subr.bf16.mxu0 %v3165_v11  ;;  %1221 = vmatprep.subr.bf16.mxu1 %v3168_v12  ;;  %v3250_v11 = vld [vmem:[%s3585_s11 + $0x3c8] ss:$16 sps:$4 sm:$0xff]   ;;  %v3255_v12 = vld [vmem:[%s3585_s11 + $0x3e4] ss:$16 sps:$4 sm:$0xff]  }
  0x57   : > { %1131 = vmatmul.mubr.bf16.vlgmr.msra.gmra.mrb[0].mxu0 %v3668_v14  ;;  %1213 = vmatmul.mubr.bf16.vlgmr.msra.gmra.mrb[0].mxu1 %v3668_v14 }
  0x58   : > { %1140 = vmatpush1.bf16.msra.mxu0 %v3163_v13  ;;  %1222 = vmatpush1.bf16.msra.mxu1 %v3166_v15  ;;  %v3258_v13 = vld [vmem:[%s3585_s11 + $0x3ec] ss:$16 sps:$4 sm:$0xff]   ;;  %v3253_v15 = vld [vmem:[%s3585_s11 + $0x3e0] ss:$16 sps:$4 sm:$0xff]  }
  0x59   : > { %1141 = vmatprep.subr.bf16.mxu0 %v3171_v16  ;;  %1223 = vmatprep.subr.bf16.mxu1 %v3174_v17  ;;  %v3256_v16 = vld [vmem:[%s3585_s11 + $0x3e8] ss:$16 sps:$4 sm:$0xff]   ;;  %v452_v17 = vcombine.high %v3668_v14, %v3668_v14  ;;  %v299_v14 = vld [vmem:[#allocation2] sm:$0xf] }
  0x5a   : > { %1171 = vmatprep.mubr.bf16.mxu0 %v453_v18  ;;  %1253 = vmatprep.mubr.bf16.mxu1 %v453_v18 }
  0x5c   : > { %1142 = vmatpush1.bf16.msra.mxu0 %v3169_v19  ;;  %1224 = vmatpush1.bf16.msra.mxu1 %v3172_v20 }
  0x5d   : > { %1143 = vmatprep.subr.bf16.mxu0 %v3177_v21  ;;  %1225 = vmatprep.subr.bf16.mxu1 %v3180_v22 }
  0x60   : > { %1144 = vmatpush1.bf16.msra.mxu0 %v3175_v23  ;;  %1226 = vmatpush1.bf16.msra.mxu1 %v3178_v24 }
  0x61   : > { %1145 = vmatprep.subr.bf16.mxu0 %v3183_v25  ;;  %1227 = vmatprep.subr.bf16.mxu1 %v3186_v26 }
  0x64   : > { %1146 = vmatpush1.bf16.msra.mxu0 %v3181_v27  ;;  %1228 = vmatpush1.bf16.msra.mxu1 %v3184_v28 }
  0x65   : > { %1147 = vmatprep.subr.bf16.mxu0 %v3189_v29  ;;  %1229 = vmatprep.subr.bf16.mxu1 %v3192_v30 }
  0x68   : > { %1148 = vmatpush1.bf16.msra.mxu0 %v3187_v31  ;;  %1230 = vmatpush1.bf16.msra.mxu1 %v3190_v32 }
  0x69   : > { %1149 = vmatprep.subr.bf16.mxu0 %v3195_v33  ;;  %1231 = vmatprep.subr.bf16.mxu1 %v3198_v34  ;;  %v3259_v33 = vld [vmem:[%s4284_s3 + $0x4] ss:$16 sps:$4 sm:$0xff] (!%p2820_p6)   ;;  %v3261_v34 = vld [vmem:[%s4284_s3 + $0xc] ss:$16 sps:$4 sm:$0xff] (!%p2820_p6)  }
  0x6c   : > { %1150 = vmatpush1.bf16.msra.mxu0 %v3193_v35  ;;  %1232 = vmatpush1.bf16.msra.mxu1 %v3196_v36  ;;  %v3265_v35 = vld [vmem:[%s4284_s3 + $0x24] ss:$16 sps:$4 sm:$0xff] (!%p2820_p6)   ;;  %v3267_v36 = vld [vmem:[%s4284_s3 + $0x2c] ss:$16 sps:$4 sm:$0xff] (!%p2820_p6)  }
  0x6d   : > { %1151 = vmatprep.subr.bf16.mxu0 %v3201_v37  ;;  %1233 = vmatprep.subr.bf16.mxu1 %v3204_v38  ;;  %v3269_v37 = vld [vmem:[%s4284_s3 + $0x20] ss:$16 sps:$4 sm:$0xff] (!%p2820_p6)   ;;  %v3270_v38 = vld [vmem:[%s4284_s3 + $0x28] ss:$16 sps:$4 sm:$0xff] (!%p2820_p6)  }
  0x70   : > { %1152 = vmatpush1.bf16.msra.mxu0 %v3199_v39  ;;  %1234 = vmatpush1.bf16.msra.mxu1 %v3202_v40  ;;  %v3271_v39 = vld [vmem:[%s4284_s3 + $0x44] ss:$16 sps:$4 sm:$0xff] (!%p2820_p6)   ;;  %v3273_v40 = vld [vmem:[%s4284_s3 + $0x4c] ss:$16 sps:$4 sm:$0xff] (!%p2820_p6)  }
  0x71   : > { %1153 = vmatprep.subr.bf16.mxu0 %v3207_v41  ;;  %1235 = vmatprep.subr.bf16.mxu1 %v3210_v43  ;;  %v3275_v41 = vld [vmem:[%s4284_s3 + $0x40] ss:$16 sps:$4 sm:$0xff] (!%p2820_p6)   ;;  %v3276_v43 = vld [vmem:[%s4284_s3 + $0x48] ss:$16 sps:$4 sm:$0xff] (!%p2820_p6)  }
  0x74   : > { %1154 = vmatpush1.bf16.msra.mxu0 %v3205_v44  ;;  %1236 = vmatpush1.bf16.msra.mxu1 %v3208_v45  ;;  %v3277_v44 = vld [vmem:[%s4284_s3 + $0x64] ss:$16 sps:$4 sm:$0xff] (!%p2820_p6)   ;;  %v3279_v45 = vld [vmem:[%s4284_s3 + $0x6c] ss:$16 sps:$4 sm:$0xff] (!%p2820_p6)  }
  0x75   : > { %1155 = vmatprep.subr.bf16.mxu0 %v3213_v46  ;;  %1237 = vmatprep.subr.bf16.mxu1 %v3216_v47  ;;  %v3281_v46 = vld [vmem:[%s4284_s3 + $0x60] ss:$16 sps:$4 sm:$0xff] (!%p2820_p6)   ;;  %v3282_v47 = vld [vmem:[%s4284_s3 + $0x68] ss:$16 sps:$4 sm:$0xff] (!%p2820_p6)  }
  0x78   : > { %1156 = vmatpush1.bf16.msra.mxu0 %v3211_v49  ;;  %1238 = vmatpush1.bf16.msra.mxu1 %v3214_v50  ;;  %v3283_v49 = vld [vmem:[%s4284_s3 + $0x84] ss:$16 sps:$4 sm:$0xff] (!%p2820_p6)   ;;  %v3285_v50 = vld [vmem:[%s4284_s3 + $0x8c] ss:$16 sps:$4 sm:$0xff] (!%p2820_p6)  }
  0x79   : > { %1157 = vmatprep.subr.bf16.mxu0 %v3219_v51  ;;  %1239 = vmatprep.subr.bf16.mxu1 %v3222_v52  ;;  %v3287_v51 = vld [vmem:[%s4284_s3 + $0x80] ss:$16 sps:$4 sm:$0xff] (!%p2820_p6)   ;;  %v3288_v52 = vld [vmem:[%s4284_s3 + $0x88] ss:$16 sps:$4 sm:$0xff] (!%p2820_p6)  }
  0x7c   : > { %1158 = vmatpush1.bf16.msra.mxu0 %v3217_v54  ;;  %1240 = vmatpush1.bf16.msra.mxu1 %v3220_v55  ;;  %v3289_v54 = vld [vmem:[%s4284_s3 + $0xa4] ss:$16 sps:$4 sm:$0xff] (!%p2820_p6)   ;;  %v3291_v55 = vld [vmem:[%s4284_s3 + $0xac] ss:$16 sps:$4 sm:$0xff] (!%p2820_p6)  }
  0x7d   : > { %1159 = vmatprep.subr.bf16.mxu0 %v3225_v56  ;;  %1241 = vmatprep.subr.bf16.mxu1 %v3228_v57  ;;  %v3293_v56 = vld [vmem:[%s4284_s3 + $0xa0] ss:$16 sps:$4 sm:$0xff] (!%p2820_p6)   ;;  %v3294_v57 = vld [vmem:[%s4284_s3 + $0xa8] ss:$16 sps:$4 sm:$0xff] (!%p2820_p6)  }
  0x80   : > { %1160 = vmatpush1.bf16.msra.mxu0 %v3223_v58  ;;  %1242 = vmatpush1.bf16.msra.mxu1 %v3226_v59  ;;  %v3295_v58 = vld [vmem:[%s4284_s3 + $0xc4] ss:$16 sps:$4 sm:$0xff] (!%p2820_p6)   ;;  %v3297_v59 = vld [vmem:[%s4284_s3 + $0xcc] ss:$16 sps:$4 sm:$0xff] (!%p2820_p6)  }
  0x81   : > { %1161 = vmatprep.subr.bf16.mxu0 %v3231_v60  ;;  %1243 = vmatprep.subr.bf16.mxu1 %v3234_v61  ;;  %v3299_v60 = vld [vmem:[%s4284_s3 + $0xc0] ss:$16 sps:$4 sm:$0xff] (!%p2820_p6)   ;;  %v3300_v61 = vld [vmem:[%s4284_s3 + $0xc8] ss:$16 sps:$4 sm:$0xff] (!%p2820_p6)  }
  0x84   : > { %1162 = vmatpush1.bf16.msra.mxu0 %v3229_v62  ;;  %1244 = vmatpush1.bf16.msra.mxu1 %v3232_v63  ;;  %v3301_v62 = vld [vmem:[%s4284_s3 + $0xe4] ss:$16 sps:$4 sm:$0xff] (!%p2820_p6)   ;;  %v3303_v63 = vld [vmem:[%s4284_s3 + $0xec] ss:$16 sps:$4 sm:$0xff] (!%p2820_p6)  }
  0x85   : > { %1163 = vmatprep.subr.bf16.mxu0 %v3237_v0  ;;  %1245 = vmatprep.subr.bf16.mxu1 %v3240_v1  ;;  %v3305_v0 = vld [vmem:[%s4284_s3 + $0xe0] ss:$16 sps:$4 sm:$0xff] (!%p2820_p6)   ;;  %v3306_v1 = vld [vmem:[%s4284_s3 + $0xe8] ss:$16 sps:$4 sm:$0xff] (!%p2820_p6)  }
  0x88   : > { %1164 = vmatpush1.bf16.msra.mxu0 %v3235_v2  ;;  %1246 = vmatpush1.bf16.msra.mxu1 %v3238_v3  ;;  %v3307_v2 = vld [vmem:[%s4284_s3 + $0x104] ss:$16 sps:$4 sm:$0xff] (!%p2820_p6)   ;;  %v3309_v3 = vld [vmem:[%s4284_s3 + $0x10c] ss:$16 sps:$4 sm:$0xff] (!%p2820_p6)  }
  0x89   : > { %1165 = vmatprep.subr.bf16.mxu0 %v3243_v4  ;;  %1247 = vmatprep.subr.bf16.mxu1 %v3246_v5  ;;  %v3311_v4 = vld [vmem:[%s4284_s3 + $0x100] ss:$16 sps:$4 sm:$0xff] (!%p2820_p6)   ;;  %v3312_v5 = vld [vmem:[%s4284_s3 + $0x108] ss:$16 sps:$4 sm:$0xff] (!%p2820_p6)  }
  0x8c   : > { %1166 = vmatpush1.bf16.msra.mxu0 %v3241_v6  ;;  %1248 = vmatpush1.bf16.msra.mxu1 %v3244_v7  ;;  %v3313_v6 = vld [vmem:[%s4284_s3 + $0x124] ss:$16 sps:$4 sm:$0xff] (!%p2820_p6)   ;;  %v3315_v7 = vld [vmem:[%s4284_s3 + $0x12c] ss:$16 sps:$4 sm:$0xff] (!%p2820_p6)  }
  0x8d   : > { %1167 = vmatprep.subr.bf16.mxu0 %v3249_v8  ;;  %1249 = vmatprep.subr.bf16.mxu1 %v3252_v9  ;;  %v3317_v8 = vld [vmem:[%s4284_s3 + $0x120] ss:$16 sps:$4 sm:$0xff] (!%p2820_p6)   ;;  %v3318_v9 = vld [vmem:[%s4284_s3 + $0x128] ss:$16 sps:$4 sm:$0xff] (!%p2820_p6)  }
  0x90   : > { %1168 = vmatpush1.bf16.msra.mxu0 %v3247_v10  ;;  %1250 = vmatpush1.bf16.msra.mxu1 %v3250_v11  ;;  %v3319_v10 = vld [vmem:[%s4284_s3 + $0x144] ss:$16 sps:$4 sm:$0xff] (!%p2820_p6)   ;;  %v3321_v11 = vld [vmem:[%s4284_s3 + $0x14c] ss:$16 sps:$4 sm:$0xff] (!%p2820_p6)  }
  0x91   : > { %1169 = vmatprep.subr.bf16.mxu0 %v3255_v12  ;;  %1251 = vmatprep.subr.bf16.mxu1 %v3258_v13  ;;  %v3323_v12 = vld [vmem:[%s4284_s3 + $0x140] ss:$16 sps:$4 sm:$0xff] (!%p2820_p6)   ;;  %v3324_v13 = vld [vmem:[%s4284_s3 + $0x148] ss:$16 sps:$4 sm:$0xff] (!%p2820_p6)  }
  0x94   : > { %1170 = vmatpush1.bf16.msra.mxu0 %v3253_v15  ;;  %1252 = vmatpush1.bf16.msra.mxu1 %v3256_v16  ;;  %v3325_v15 = vld [vmem:[%s4284_s3 + $0x164] ss:$16 sps:$4 sm:$0xff] (!%p2820_p6)   ;;  %v3327_v16 = vld [vmem:[%s4284_s3 + $0x16c] ss:$16 sps:$4 sm:$0xff] (!%p2820_p6)  }
  0x95   : > { %2120 = vmatprep.subr.bf16.mxu0 (!%p2820_p6), %v3259_v33  ;;  %2202 = vmatprep.subr.bf16.mxu1 (!%p2820_p6), %v3261_v34  ;;  %v3343_v33 = vld [vmem:[%s4284_s3 + $0x1c4] ss:$16 sps:$4 sm:$0xff] (!%p2820_p6)   ;;  %v3345_v34 = vld [vmem:[%s4284_s3 + $0x1cc] ss:$16 sps:$4 sm:$0xff] (!%p2820_p6)  }
  0x97   : > { %1172 = vmatmul.mubr.bf16.vlgmr.msra.gmra.mrb[0].mxu0 %v452_v17  ;;  %1254 = vmatmul.mubr.bf16.vlgmr.msra.gmra.mrb[0].mxu1 %v452_v17 }
  0x98   : > { %2203 = vmatpush1.bf16.msra.mxu1 (!%p2820_p6), %v3264_v42  ;;  %v3347_v42 = vld [vmem:[%s4284_s3 + $0x1c0] ss:$16 sps:$4 sm:$0xff] (!%p2820_p6)  }
  0x99   : > { %2204 = vmatprep.subr.bf16.mxu1 (!%p2820_p6), %v3267_v36  ;;  %v3349_v36 = vld [vmem:[%s4284_s3 + $0x1e4] ss:$16 sps:$4 sm:$0xff] (!%p2820_p6)  }
  0x9c   : > { %2205 = vmatpush1.bf16.msra.mxu1 (!%p2820_p6), %v3270_v38  ;;  %v1320_v38 = vsub.s32 (!%p2820_p6), 3, %v3631_v48 }
  0x9d   : > { %2206 = vmatprep.subr.bf16.mxu1 (!%p2820_p6), %v3273_v40  ;;  %v3353_v40 = vld [vmem:[%s4284_s3 + $0x1e0] ss:$16 sps:$4 sm:$0xff] (!%p2820_p6)  }
  0xa0   : > { %2207 = vmatpush1.bf16.msra.mxu1 (!%p2820_p6), %v3276_v43  ;;  %v3357_v43 = vld [vmem:[%s4284_s3 + $0x204] ss:$16 sps:$4 sm:$0xff] (!%p2820_p6)  }
  0xa1   : > { %2208 = vmatprep.subr.bf16.mxu1 (!%p2820_p6), %v3279_v45 }
  0xa4   : > { %2209 = vmatpush1.bf16.msra.mxu1 (!%p2820_p6), %v3282_v47  ;;  %v3355_v47 = vld [vmem:[%s4284_s3 + $0x200] ss:$16 sps:$4 sm:$0xff] (!%p2820_p6)  }
  0xa5   : > { %2210 = vmatprep.subr.bf16.mxu1 (!%p2820_p6), %v3285_v50  ;;  %v3363_v50 = vld [vmem:[%s4284_s3 + $0x224] ss:$16 sps:$4 sm:$0xff] (!%p2820_p6)  }
  0xa8   : > { %2211 = vmatpush1.bf16.msra.mxu1 (!%p2820_p6), %v3288_v52 }
  0xa9   : > { %2212 = vmatprep.subr.bf16.mxu1 (!%p2820_p6), %v3291_v55  ;;  %v3364_v55 = vld [vmem:[%s4284_s3 + $0x228] ss:$16 sps:$4 sm:$0xff] (!%p2820_p6)  }
  0xac   : > { %2213 = vmatpush1.bf16.msra.mxu1 (!%p2820_p6), %v3294_v57  ;;  %v3372_v57 = vld [vmem:[%s4284_s3 + $0x24c] ss:$16 sps:$4 sm:$0xff] (!%p2820_p6)  }
  0xad   : > { %2214 = vmatprep.subr.bf16.mxu1 (!%p2820_p6), %v3297_v59  ;;  %v3370_v59 = vld [vmem:[%s4284_s3 + $0x248] ss:$16 sps:$4 sm:$0xff] (!%p2820_p6)  }
  0xb0   : > { %2215 = vmatpush1.bf16.msra.mxu1 (!%p2820_p6), %v3300_v61  ;;  %v3378_v61 = vld [vmem:[%s4284_s3 + $0x26c] ss:$16 sps:$4 sm:$0xff] (!%p2820_p6)  }
  0xb1   : > { %2216 = vmatprep.subr.bf16.mxu1 (!%p2820_p6), %v3303_v63  ;;  %v3376_v63 = vld [vmem:[%s4284_s3 + $0x268] ss:$16 sps:$4 sm:$0xff] (!%p2820_p6)  }
  0xb4   : > { %2217 = vmatpush1.bf16.msra.mxu1 (!%p2820_p6), %v3306_v1  ;;  %v3384_v1 = vld [vmem:[%s4284_s3 + $0x28c] ss:$16 sps:$4 sm:$0xff] (!%p2820_p6)  }
  0xb5   : > { %2218 = vmatprep.subr.bf16.mxu1 (!%p2820_p6), %v3309_v3  ;;  %v3382_v3 = vld [vmem:[%s4284_s3 + $0x288] ss:$16 sps:$4 sm:$0xff] (!%p2820_p6)  }
  0xb8   : > { %2219 = vmatpush1.bf16.msra.mxu1 (!%p2820_p6), %v3312_v5  ;;  %v3390_v5 = vld [vmem:[%s4284_s3 + $0x2ac] ss:$16 sps:$4 sm:$0xff] (!%p2820_p6)  }
  0xb9   : > { %2220 = vmatprep.subr.bf16.mxu1 (!%p2820_p6), %v3315_v7  ;;  %v3388_v7 = vld [vmem:[%s4284_s3 + $0x2a8] ss:$16 sps:$4 sm:$0xff] (!%p2820_p6)  }
  0xbc   : > { %2221 = vmatpush1.bf16.msra.mxu1 (!%p2820_p6), %v3318_v9  ;;  %v3396_v9 = vld [vmem:[%s4284_s3 + $0x2cc] ss:$16 sps:$4 sm:$0xff] (!%p2820_p6)  }
  0xbd   : > { %2222 = vmatprep.subr.bf16.mxu1 (!%p2820_p6), %v3321_v11  ;;  %v3394_v11 = vld [vmem:[%s4284_s3 + $0x2c8] ss:$16 sps:$4 sm:$0xff] (!%p2820_p6)  }
  0xc0   : > { %2223 = vmatpush1.bf16.msra.mxu1 (!%p2820_p6), %v3324_v13  ;;  %v3402_v13 = vld [vmem:[%s4284_s3 + $0x2ec] ss:$16 sps:$4 sm:$0xff] (!%p2820_p6)  }
  0xc1   : > { %2224 = vmatprep.subr.bf16.mxu1 (!%p2820_p6), %v3327_v16  ;;  %v3400_v16 = vld [vmem:[%s4284_s3 + $0x2e8] ss:$16 sps:$4 sm:$0xff] (!%p2820_p6)  }
 0x16a   : > { %v1173_v18 = vpop.f32.mrb[0].mxu0  ;;  %v1255_v19 = vpop.f32.mrb[0].mxu1 }
 0x16b   : > { %v1175_v20 = vpop.f32.mrb[1].mxu0  ;;  %v1257_v21 = vpop.f32.mrb[1].mxu1 }
 0x16c   : > { %v1266_v22 = vcombine.low %v1173_v18, %v1175_v20  ;;  %v1267_v23 = vcombine.low %v1255_v19, %v1257_v21  ;;  %v1177_v24 = vpop.f32.mrb[2].mxu0  ;;  %v1259_v25 = vpop.f32.mrb[2].mxu1  ;;  %v1302_v18 = vld [vmem:[%s4283_s2] sm:$0xf] (!%p2820_p6)  ;;  %v3330_v20 = vld [vmem:[%s4284_s3 + $0x168] ss:$16 sps:$4 sm:$0xff] (!%p2820_p6)  }
 0x16d   : > { %v1178_v26 = vpop.f32.mrb[3].mxu0  ;;  %v1260_v27 = vpop.f32.mrb[3].mxu1  ;;  %v3329_v19 = vld [vmem:[%s4284_s3 + $0x160] ss:$16 sps:$4 sm:$0xff] (!%p2820_p6)   ;;  %v3333_v24 = vld [vmem:[%s4284_s3 + $0x18c] ss:$16 sps:$4 sm:$0xff] (!%p2820_p6)   ;;  %2225 = vmatpush1.bf16.msra.mxu1 (!%p2820_p6), %v3330_v20 }
 0x16e   : > { %v1274_v28 = vrot.slane %v1266_v22, %v3638_v53  ;;  %v1281_v29 = vrot.slane %v1267_v23, %v3638_v53  ;;  %v1312_v22 = vsub.s32 (!%p2820_p6), 1, %v3631_v48  ;;  %v3331_v23 = vld [vmem:[%s4284_s3 + $0x184] ss:$16 sps:$4 sm:$0xff] (!%p2820_p6)   ;;  %v3335_v26 = vld [vmem:[%s4284_s3 + $0x180] ss:$16 sps:$4 sm:$0xff] (!%p2820_p6)   ;;  %2226 = vmatprep.subr.bf16.mxu1 (!%p2820_p6), %v3333_v24 }
 0x16f   : > { %v3336_v27 = vld [vmem:[%s4284_s3 + $0x188] ss:$16 sps:$4 sm:$0xff] (!%p2820_p6)   ;;  %v3409_v24 = vld [vmem:[%s4284_s3 + $0x320] ss:$16 sps:$4 sm:$0xff] (!%p2820_p6)  }
 0x170   : > { %v1282_v30 = vcombine.low %v1274_v28, %v1281_v29  ;;  %1300 = sbr.rel (%p2820_p6) target bundleno = 936 (0x3a8), region = 56  ;;  %v3337_v29 = vld [vmem:[%s4284_s3 + $0x1a4] ss:$16 sps:$4 sm:$0xff] (!%p2820_p6)   ;;  %v3406_v20 = vld [vmem:[%s4284_s3 + $0x308] ss:$16 sps:$4 sm:$0xff] (!%p2820_p6)  }
 0x171   : > { %2227 = vmatpush1.bf16.msra.mxu1 (!%p2820_p6), %v3336_v27  ;;  %v3417_v27 = vld [vmem:[%s4284_s3 + $0x344] ss:$16 sps:$4 sm:$0xff] (!%p2820_p6)  }
 0x172   : > { %v1289_v31 = vrot.slane %v1282_v30, %v3638_v53  ;;  %v3263_v53 = vld [vmem:[%s4284_s3] ss:$16 sps:$4 sm:$0xff] (!%p2820_p6)   ;;  %v3339_v30 = vld [vmem:[%s4284_s3 + $0x1ac] ss:$16 sps:$4 sm:$0xff] (!%p2820_p6)  }
 0x173   : > { %2121 = vmatpush1.bf16.msra.mxu0 (!%p2820_p6), %v3263_v53  ;;  %2228 = vmatprep.subr.bf16.mxu1 (!%p2820_p6), %v3339_v30  ;;  %v1308_v53 = vsub.s32 (!%p2820_p6), 0, %v3631_v48  ;;  %v3418_v30 = vld [vmem:[%s4284_s3 + $0x348] ss:$16 sps:$4 sm:$0xff] (!%p2820_p6)  }
 0x174   : > { %v1291_v32 = vadd.f32 %v1289_v31, %v299_v14  ;;  %2122 = vmatprep.subr.bf16.mxu0 (!%p2820_p6), %v3265_v35  ;;  %v3341_v31 = vld [vmem:[%s4284_s3 + $0x1a0] ss:$16 sps:$4 sm:$0xff] (!%p2820_p6)   ;;  %v3348_v35 = vld [vmem:[%s4284_s3 + $0x1c8] ss:$16 sps:$4 sm:$0xff] (!%p2820_p6)  }
 0x176   : > { %1296 = vst.msk [vmem:[#allocation2] sm:$0xf] %vm1294_vm1, %v1291_v32  ;;  %v3342_v32 = vld [vmem:[%s4284_s3 + $0x1a8] ss:$16 sps:$4 sm:$0xff] (!%p2820_p6)  }
 0x177   : > { %2123 = vmatpush1.bf16.msra.mxu0 %v3269_v37  ;;  %2229 = vmatpush1.bf16.msra.mxu1 %v3342_v32  ;;  %v3351_v37 = vld [vmem:[%s4284_s3 + $0x1ec] ss:$16 sps:$4 sm:$0xff]   ;;  %v3421_v32 = vld [vmem:[%s4284_s3 + $0x360] ss:$16 sps:$4 sm:$0xff]  }
 0x178   : > { %2124 = vmatprep.subr.bf16.mxu0 %v3271_v39  ;;  %2230 = vmatprep.subr.bf16.mxu1 %v3345_v34  ;;  %v3429_v34 = vld [vmem:[%s4284_s3 + $0x384] ss:$16 sps:$4 sm:$0xff]  }
 0x17b   : > { %2125 = vmatpush1.bf16.msra.mxu0 %v3275_v41  ;;  %2231 = vmatpush1.bf16.msra.mxu1 %v3348_v35  ;;  %v3354_v41 = vld [vmem:[%s4284_s3 + $0x1e8] ss:$16 sps:$4 sm:$0xff]   ;;  %v3427_v35 = vld [vmem:[%s4284_s3 + $0x380] ss:$16 sps:$4 sm:$0xff]  }
 0x17c   : > { %2126 = vmatprep.subr.bf16.mxu0 %v3277_v44  ;;  %2232 = vmatprep.subr.bf16.mxu1 %v3351_v37  ;;  %v3360_v44 = vld [vmem:[%s4284_s3 + $0x20c] ss:$16 sps:$4 sm:$0xff]   ;;  %v3435_v37 = vld [vmem:[%s4284_s3 + $0x3a4] ss:$16 sps:$4 sm:$0xff]  }
 0x17d   : > { %v1301_v17 = vld [vmem:[#allocation2] sm:$0xf] }
 0x17e   : > { %v1303_v21 = vadd.f32 %v1302_v18, %v1301_v17  ;;  %v3405_v17 = vld [vmem:[%s4284_s3 + $0x304] ss:$16 sps:$4 sm:$0xff]   ;;  %v3408_v18 = vld [vmem:[%s4284_s3 + $0x30c] ss:$16 sps:$4 sm:$0xff]  }
 0x17f   : > { %2127 = vmatpush1.bf16.msra.mxu0 %v3281_v46  ;;  %2233 = vmatpush1.bf16.msra.mxu1 %v3354_v41  ;;  %v3436_v41 = vld [vmem:[%s4284_s3 + $0x3a8] ss:$16 sps:$4 sm:$0xff]  }
 0x180   : > { %2128 = vmatprep.subr.bf16.mxu0 %v3283_v49  ;;  %v3894_v25 = vmax.f32 %v1303_v21, 0.0  ;;  %v3358_v49 = vld [vmem:[%s4284_s3 + $0x208] ss:$16 sps:$4 sm:$0xff]   ;;  %2243 = vmatprep.subr.bf16.mxu1 %v3360_v44  ;;  %v3411_v21 = vld [vmem:[%s4284_s3 + $0x324] ss:$16 sps:$4 sm:$0xff]  }
 0x181   : > { %v3444_v44 = vld [vmem:[%s4284_s3 + $0x3cc] ss:$16 sps:$4 sm:$0xff]  }
 0x182   : > { %v1313_v28 = vrot.slane %v3894_v25, %v1312_v22  ;;  %v1309_v39 = vrot.slane %v3894_v25, %v1308_v53  ;;  %v1321_v45 = vrot.slane %v3894_v25, %v1320_v38 }
 0x183   : > { %2129 = vmatpush1.bf16.msra.mxu0 %v3287_v51  ;;  %v3366_v51 = vld [vmem:[%s4284_s3 + $0x22c] ss:$16 sps:$4 sm:$0xff]  }
 0x184   : > { %2130 = vmatprep.subr.bf16.mxu0 %v3289_v54  ;;  %v1327_v14 = vpack.c.bf16 %v1313_v28, %v1313_v28  ;;  %v1326_v46 = vpack.c.bf16 %v1309_v39, %v1309_v39  ;;  %v1329_v52 = vpack.c.bf16 %v1321_v45, %v1321_v45  ;;  %v3361_v54 = vld [vmem:[%s4284_s3 + $0x220] ss:$16 sps:$4 sm:$0xff]   ;;  %v3420_v28 = vld [vmem:[%s4284_s3 + $0x34c] ss:$16 sps:$4 sm:$0xff]   ;;  %v1316_v45 = vsub.s32 2, %v3631_v48 }
 0x185   : > { %v3438_v39 = vld [vmem:[%s4284_s3 + $0x3ac] ss:$16 sps:$4 sm:$0xff]  }
 0x186   : > { %2152 = vmatprep.mubr.bf16.mxu0 %v1327_v14  ;;  %2234 = vmatprep.mubr.bf16.mxu1 %v1327_v14  ;;  %v3423_v14 = vld [vmem:[%s4284_s3 + $0x364] ss:$16 sps:$4 sm:$0xff]  }
 0x187   : > { %2131 = vmatpush1.bf16.msra.mxu0 %v3293_v56  ;;  %2235 = vmatmul.mubr.bf16.vlgmr.msra.gmra.mrb[0].mxu1 %v1326_v46  ;;  %v3369_v56 = vld [vmem:[%s4284_s3 + $0x244] ss:$16 sps:$4 sm:$0xff]  }
 0x188   : > { %2132 = vmatprep.subr.bf16.mxu0 %v3295_v58  ;;  %2244 = vmatpush1.bf16.msra.mxu1 %v3358_v49  ;;  %v3367_v58 = vld [vmem:[%s4284_s3 + $0x240] ss:$16 sps:$4 sm:$0xff]   ;;  %v3447_v49 = vld [vmem:[%s4284_s3 + $0x3e4] ss:$16 sps:$4 sm:$0xff]  }
 0x189   : > { %2245 = vmatprep.subr.bf16.mxu1 %v3366_v51  ;;  %2275 = vmatprep.mubr.bf16.mxu1 %v1329_v52  ;;  %v1317_v51 = vrot.slane %v3894_v25, %v1316_v45  ;;  %v3452_v25 = vld [vmem:[%s4286_s5 + $0xc0] sm:$0xff]  }
 0x18b   : > { %2133 = vmatpush1.bf16.msra.mxu0 %v3299_v60  ;;  %v3375_v60 = vld [vmem:[%s4284_s3 + $0x264] ss:$16 sps:$4 sm:$0xff]  }
 0x18c   : > { %2134 = vmatprep.subr.bf16.mxu0 %v3301_v62  ;;  %2246 = vmatpush1.bf16.msra.mxu1 %v3364_v55  ;;  %v3373_v62 = vld [vmem:[%s4284_s3 + $0x260] ss:$16 sps:$4 sm:$0xff]  }
 0x18d   : > { %2247 = vmatprep.subr.bf16.mxu1 %v3372_v57  ;;  %v3451_v55 = vld [vmem:[%s4286_s5 + $0x40] sm:$0xff]  }
 0x18e   : > { %v3453_v57 = vld [vmem:[%s4286_s5] sm:$0xff]  }
 0x18f   : > { %2135 = vmatpush1.bf16.msra.mxu0 %v3305_v0  ;;  %v3381_v0 = vld [vmem:[%s4284_s3 + $0x284] ss:$16 sps:$4 sm:$0xff]  }
 0x190   : > { %2136 = vmatprep.subr.bf16.mxu0 %v3307_v2  ;;  %2248 = vmatpush1.bf16.msra.mxu1 %v3370_v59  ;;  %v3379_v2 = vld [vmem:[%s4284_s3 + $0x280] ss:$16 sps:$4 sm:$0xff]   ;;  %v3455_v59 = vld [vmem:[%s4286_s5 + $0x48] sm:$0xff]  }
 0x191   : > { %2249 = vmatprep.subr.bf16.mxu1 %v3378_v61  ;;  %v3457_v61 = vld [vmem:[%s4286_s5 + $0x8] sm:$0xff]  }
 0x193   : > { %2137 = vmatpush1.bf16.msra.mxu0 %v3311_v4  ;;  %v3387_v4 = vld [vmem:[%s4284_s3 + $0x2a4] ss:$16 sps:$4 sm:$0xff]  }
 0x194   : > { %2138 = vmatprep.subr.bf16.mxu0 %v3313_v6  ;;  %2250 = vmatpush1.bf16.msra.mxu1 %v3376_v63  ;;  %v3385_v6 = vld [vmem:[%s4284_s3 + $0x2a0] ss:$16 sps:$4 sm:$0xff]  }
 0x195   : > { %2251 = vmatprep.subr.bf16.mxu1 %v3384_v1  ;;  %v3459_v63 = vld [vmem:[%s4286_s5 + $0x50] sm:$0xff]  }
 0x196   : > { %v3461_v1 = vld [vmem:[%s4286_s5 + $0x10] sm:$0xff]  }
 0x197   : > { %2139 = vmatpush1.bf16.msra.mxu0 %v3317_v8  ;;  %v3393_v8 = vld [vmem:[%s4284_s3 + $0x2c4] ss:$16 sps:$4 sm:$0xff]  }
 0x198   : > { %2140 = vmatprep.subr.bf16.mxu0 %v3319_v10  ;;  %2252 = vmatpush1.bf16.msra.mxu1 %v3382_v3  ;;  %v3391_v10 = vld [vmem:[%s4284_s3 + $0x2c0] ss:$16 sps:$4 sm:$0xff]   ;;  %v3463_v3 = vld [vmem:[%s4286_s5 + $0x58] sm:$0xff]  }
 0x199   : > { %2253 = vmatprep.subr.bf16.mxu1 %v3390_v5  ;;  %v3465_v5 = vld [vmem:[%s4286_s5 + $0x18] sm:$0xff]  }
 0x19b   : > { %2141 = vmatpush1.bf16.msra.mxu0 %v3323_v12  ;;  %v3399_v12 = vld [vmem:[%s4284_s3 + $0x2e4] ss:$16 sps:$4 sm:$0xff]  }
 0x19c   : > { %2142 = vmatprep.subr.bf16.mxu0 %v3325_v15  ;;  %2254 = vmatpush1.bf16.msra.mxu1 %v3388_v7  ;;  %v3397_v15 = vld [vmem:[%s4284_s3 + $0x2e0] ss:$16 sps:$4 sm:$0xff]  }
 0x19d   : > { %2255 = vmatprep.subr.bf16.mxu1 %v3396_v9  ;;  %v3467_v7 = vld [vmem:[%s4286_s5 + $0x60] sm:$0xff]  }
 0x19e   : > { %v3469_v9 = vld [vmem:[%s4286_s5 + $0x20] sm:$0xff]  }
 0x19f   : > { %2143 = vmatpush1.bf16.msra.mxu0 %v3329_v19  ;;  %v3403_v19 = vld [vmem:[%s4284_s3 + $0x300] ss:$16 sps:$4 sm:$0xff]  }
 0x1a0   : > { %2144 = vmatprep.subr.bf16.mxu0 %v3331_v23  ;;  %2256 = vmatpush1.bf16.msra.mxu1 %v3394_v11  ;;  %v3414_v23 = vld [vmem:[%s4284_s3 + $0x32c] ss:$16 sps:$4 sm:$0xff]  }
 0x1a1   : > { %2257 = vmatprep.subr.bf16.mxu1 %v3402_v13  ;;  %v3471_v11 = vld [vmem:[%s4286_s5 + $0x68] sm:$0xff]  }
 0x1a2   : > { %v3473_v13 = vld [vmem:[%s4286_s5 + $0x28] sm:$0xff]  }
 0x1a3   : > { %2145 = vmatpush1.bf16.msra.mxu0 %v3335_v26  ;;  %v3412_v26 = vld [vmem:[%s4284_s3 + $0x328] ss:$16 sps:$4 sm:$0xff]  }
 0x1a4   : > { %2146 = vmatprep.subr.bf16.mxu0 %v3337_v29  ;;  %2258 = vmatpush1.bf16.msra.mxu1 %v3400_v16  ;;  %v3415_v29 = vld [vmem:[%s4284_s3 + $0x340] ss:$16 sps:$4 sm:$0xff]  }
 0x1a5   : > { %2259 = vmatprep.subr.bf16.mxu1 %v3408_v18  ;;  %v3475_v16 = vld [vmem:[%s4286_s5 + $0x70] sm:$0xff]  }
 0x1a6   : > { %v3477_v18 = vld [vmem:[%s4286_s5 + $0x30] sm:$0xff]  }
 0x1a7   : > { %2147 = vmatpush1.bf16.msra.mxu0 %v3341_v31  ;;  %v3426_v31 = vld [vmem:[%s4284_s3 + $0x36c] ss:$16 sps:$4 sm:$0xff]  }
 0x1a8   : > { %2148 = vmatprep.subr.bf16.mxu0 %v3343_v33  ;;  %2260 = vmatpush1.bf16.msra.mxu1 %v3406_v20  ;;  %v3424_v33 = vld [vmem:[%s4284_s3 + $0x368] ss:$16 sps:$4 sm:$0xff]  }
 0x1a9   : > { %2261 = vmatprep.subr.bf16.mxu1 %v3414_v23  ;;  %v3479_v20 = vld [vmem:[%s4286_s5 + $0x78] sm:$0xff]  }
 0x1aa   : > { %v3481_v23 = vld [vmem:[%s4286_s5 + $0x38] sm:$0xff]  }
 0x1ab   : > { %2149 = vmatpush1.bf16.msra.mxu0 %v3347_v42  ;;  %v3432_v42 = vld [vmem:[%s4284_s3 + $0x38c] ss:$16 sps:$4 sm:$0xff]  }
 0x1ac   : > { %2150 = vmatprep.subr.bf16.mxu0 %v3349_v36  ;;  %2262 = vmatpush1.bf16.msra.mxu1 %v3412_v26  ;;  %v3430_v36 = vld [vmem:[%s4284_s3 + $0x388] ss:$16 sps:$4 sm:$0xff]   ;;  %v1458_v26 = vld [vmem:[%s4285_s4] sm:$0xf] }
 0x1ad   : > { %2263 = vmatprep.subr.bf16.mxu1 %v3420_v28  ;;  %v2111_v28 = vrot.slane %v1458_v26, %v1316_v45 }
 0x1af   : > { %2151 = vmatpush1.bf16.msra.mxu0 %v3353_v40  ;;  %v3433_v40 = vld [vmem:[%s4284_s3 + $0x3a0] ss:$16 sps:$4 sm:$0xff]  }
 0x1b0   : > { %2161 = vmatprep.subr.bf16.mxu0 %v3357_v43  ;;  %2264 = vmatpush1.bf16.msra.mxu1 %v3418_v30  ;;  %v3441_v43 = vld [vmem:[%s4284_s3 + $0x3c4] ss:$16 sps:$4 sm:$0xff]   ;;  %v2115_v30 = vrot.slane %v1458_v26, %v1320_v38  ;;  %v2352_v38 = vld [vmem:[%s4287_s6] sm:$0x1] }
 0x1b1   : > { %2265 = vmatprep.subr.bf16.mxu1 %v3426_v31 }
 0x1b2   : > { %2153 = vmatmul.mubr.bf16.vlgmr.msra.gmra.mrb[0].mxu0 %v1326_v46  ;;  %v3439_v46 = vld [vmem:[%s4284_s3 + $0x3c0] ss:$16 sps:$4 sm:$0xff]  }
 0x1b3   : > { %2162 = vmatpush1.bf16.msra.mxu0 %v3355_v47  ;;  %2193 = vmatprep.mubr.bf16.mxu0 %v1329_v52  ;;  %v3442_v47 = vld [vmem:[%s4284_s3 + $0x3c8] ss:$16 sps:$4 sm:$0xff]   ;;  %v3445_v52 = vld [vmem:[%s4284_s3 + $0x3e0] ss:$16 sps:$4 sm:$0xff]  }
 0x1b4   : > { %2163 = vmatprep.subr.bf16.mxu0 %v3363_v50  ;;  %2266 = vmatpush1.bf16.msra.mxu1 %v3424_v33  ;;  %v3450_v50 = vld [vmem:[%s4284_s3 + $0x3ec] ss:$16 sps:$4 sm:$0xff]  }
 0x1b5   : > { %2267 = vmatprep.subr.bf16.mxu1 %v3432_v42 }
 0x1b7   : > { %2164 = vmatpush1.bf16.msra.mxu0 %v3361_v54  ;;  %v3448_v54 = vld [vmem:[%s4284_s3 + $0x3e8] ss:$16 sps:$4 sm:$0xff]  }
 0x1b8   : > { %2165 = vmatprep.subr.bf16.mxu0 %v3369_v56  ;;  %2268 = vmatpush1.bf16.msra.mxu1 %v3430_v36  ;;  %v1328_v56 = vpack.c.bf16 %v1317_v51, %v1317_v51 }
 0x1b9   : > { %2269 = vmatprep.subr.bf16.mxu1 %v3438_v39 }
 0x1bb   : > { %2166 = vmatpush1.bf16.msra.mxu0 %v3367_v58  ;;  %v3454_v58 = vld [vmem:[%s4286_s5 + $0x80] sm:$0xff]  }
 0x1bc   : > { %2167 = vmatprep.subr.bf16.mxu0 %v3375_v60  ;;  %2270 = vmatpush1.bf16.msra.mxu1 %v3436_v41  ;;  %v3456_v60 = vld [vmem:[%s4286_s5 + $0xc8] sm:$0xff]  }
 0x1bd   : > { %2271 = vmatprep.subr.bf16.mxu1 %v3444_v44 }
 0x1bf   : > { %2168 = vmatpush1.bf16.msra.mxu0 %v3373_v62  ;;  %v3458_v62 = vld [vmem:[%s4286_s5 + $0x88] sm:$0xff]  }
 0x1c0   : > { %2169 = vmatprep.subr.bf16.mxu0 %v3381_v0  ;;  %2272 = vmatpush1.bf16.msra.mxu1 %v3442_v47  ;;  %v3460_v0 = vld [vmem:[%s4286_s5 + $0xd0] sm:$0xff]  }
 0x1c1   : > { %2273 = vmatprep.subr.bf16.mxu1 %v3450_v50 }
 0x1c3   : > { %2170 = vmatpush1.bf16.msra.mxu0 %v3379_v2  ;;  %v3462_v2 = vld [vmem:[%s4286_s5 + $0x90] sm:$0xff]  }
 0x1c4   : > { %2171 = vmatprep.subr.bf16.mxu0 %v3387_v4  ;;  %2274 = vmatpush1.bf16.msra.mxu1 %v3448_v54  ;;  %v3464_v4 = vld [vmem:[%s4286_s5 + $0xd8] sm:$0xff]  }
 0x1c5   : > { %3008 = vmatprep.subr.bf16.mxu1 %v3452_v25 }
 0x1c7   : > { %2172 = vmatpush1.bf16.msra.mxu0 %v3385_v6  ;;  %2276 = vmatmul.mubr.bf16.vlgmr.msra.gmra.mrb[0].mxu1 %v1328_v56  ;;  %v3466_v6 = vld [vmem:[%s4286_s5 + $0x98] sm:$0xff]  }
 0x1c8   : > { %2173 = vmatprep.subr.bf16.mxu0 %v3393_v8  ;;  %3009 = vmatpush3.bf16.msra.mxu1 %v3454_v58  ;;  %v3468_v8 = vld [vmem:[%s4286_s5 + $0xe0] sm:$0xff]  }
 0x1c9   : > { %3010 = vmatprep.subr.bf16.mxu1 %v3456_v60 }
 0x1cb   : > { %2174 = vmatpush1.bf16.msra.mxu0 %v3391_v10  ;;  %v3470_v10 = vld [vmem:[%s4286_s5 + $0xa0] sm:$0xff]  }
 0x1cc   : > { %2175 = vmatprep.subr.bf16.mxu0 %v3399_v12  ;;  %3011 = vmatpush3.bf16.msra.mxu1 %v3458_v62  ;;  %v3472_v12 = vld [vmem:[%s4286_s5 + $0xe8] sm:$0xff]  }
 0x1cd   : > { %3012 = vmatprep.subr.bf16.mxu1 %v3460_v0 }
 0x1cf   : > { %2176 = vmatpush1.bf16.msra.mxu0 %v3397_v15  ;;  %v3474_v15 = vld [vmem:[%s4286_s5 + $0xa8] sm:$0xff]  }
 0x1d0   : > { %2177 = vmatprep.subr.bf16.mxu0 %v3405_v17  ;;  %3013 = vmatpush3.bf16.msra.mxu1 %v3462_v2  ;;  %v3476_v17 = vld [vmem:[%s4286_s5 + $0xf0] sm:$0xff]  }
 0x1d1   : > { %3014 = vmatprep.subr.bf16.mxu1 %v3464_v4 }
 0x1d3   : > { %2178 = vmatpush1.bf16.msra.mxu0 %v3403_v19  ;;  %v3478_v19 = vld [vmem:[%s4286_s5 + $0xb0] sm:$0xff]  }
 0x1d4   : > { %2179 = vmatprep.subr.bf16.mxu0 %v3411_v21  ;;  %3015 = vmatpush3.bf16.msra.mxu1 %v3466_v6  ;;  %v3480_v21 = vld [vmem:[%s4286_s5 + $0xf8] sm:$0xff]  }
 0x1d5   : > { %3016 = vmatprep.subr.bf16.mxu1 %v3468_v8 }
 0x1d7   : > { %2180 = vmatpush1.bf16.msra.mxu0 %v3409_v24  ;;  %v3482_v24 = vld [vmem:[%s4286_s5 + $0xb8] sm:$0xff]  }
 0x1d8   : > { %2181 = vmatprep.subr.bf16.mxu0 %v3417_v27  ;;  %3017 = vmatpush3.bf16.msra.mxu1 %v3470_v10  ;;  %v2103_v27 = vrot.slane %v1458_v26, %v1308_v53 }
 0x1d9   : > { %3018 = vmatprep.subr.bf16.mxu1 %v3472_v12 }
 0x1db   : > { %2182 = vmatpush1.bf16.msra.mxu0 %v3415_v29  ;;  %v2107_v29 = vrot.slane %v1458_v26, %v1312_v22 }
 0x1dc   : > { %2183 = vmatprep.subr.bf16.mxu0 %v3423_v14  ;;  %3019 = vmatpush3.bf16.msra.mxu1 %v3474_v15 }
 0x1dd   : > { %3020 = vmatprep.subr.bf16.mxu1 %v3476_v17 }
 0x1df   : > { %2184 = vmatpush1.bf16.msra.mxu0 %v3421_v32 }
 0x1e0   : > { %2185 = vmatprep.subr.bf16.mxu0 %v3429_v34  ;;  %3021 = vmatpush3.bf16.msra.mxu1 %v3478_v19 }
 0x1e1   : > { %3022 = vmatprep.subr.bf16.mxu1 %v3480_v21 }
 0x1e3   : > { %2186 = vmatpush1.bf16.msra.mxu0 %v3427_v35 }
 0x1e4   : > { %2187 = vmatprep.subr.bf16.mxu0 %v3435_v37  ;;  %3023 = vmatpush3.bf16.msra.mxu1 %v3482_v24 }
 0x1e7   : > { %2188 = vmatpush1.bf16.msra.mxu0 %v3433_v40 }
 0x1e8   : > { %2189 = vmatprep.subr.bf16.mxu0 %v3441_v43 }
 0x1eb   : > { %2190 = vmatpush1.bf16.msra.mxu0 %v3439_v46 }
 0x1ec   : > { %2191 = vmatprep.subr.bf16.mxu0 %v3447_v49 }
 0x1ef   : > { %2192 = vmatpush1.bf16.msra.mxu0 %v3445_v52 }
 0x1f0   : > { %2986 = vmatprep.subr.bf16.mxu0 %v3451_v55 }
 0x1f2   : > { %2194 = vmatmul.mubr.bf16.vlgmr.msra.gmra.mrb[0].mxu0 %v1328_v56 }
 0x1f3   : > { %2987 = vmatpush3.bf16.msra.mxu0 %v3453_v57 }
 0x1f4   : > { %2988 = vmatprep.subr.bf16.mxu0 %v3455_v59 }
 0x1f7   : > { %2989 = vmatpush3.bf16.msra.mxu0 %v3457_v61 }
 0x1f8   : > { %2990 = vmatprep.subr.bf16.mxu0 %v3459_v63 }
 0x1fb   : > { %2991 = vmatpush3.bf16.msra.mxu0 %v3461_v1 }
 0x1fc   : > { %2992 = vmatprep.subr.bf16.mxu0 %v3463_v3 }
 0x1ff   : > { %2993 = vmatpush3.bf16.msra.mxu0 %v3465_v5 }
 0x200   : > { %2994 = vmatprep.subr.bf16.mxu0 %v3467_v7 }
 0x203   : > { %2995 = vmatpush3.bf16.msra.mxu0 %v3469_v9 }
 0x204   : > { %2996 = vmatprep.subr.bf16.mxu0 %v3471_v11 }
 0x207   : > { %2997 = vmatpush3.bf16.msra.mxu0 %v3473_v13 }
 0x208   : > { %2998 = vmatprep.subr.bf16.mxu0 %v3475_v16 }
 0x20b   : > { %2999 = vmatpush3.bf16.msra.mxu0 %v3477_v18 }
 0x20c   : > { %3000 = vmatprep.subr.bf16.mxu0 %v3479_v20 }
 0x20f   : > { %3001 = vmatpush3.bf16.msra.mxu0 %v3481_v23 }
 0x29a   : > { %v2277_v31 = vpop.f32.mrb[0].mxu1 }
 0x29b   : > { %v3040_v33 = vadd.f32 %v2277_v31, %v2111_v28  ;;  %v2279_v42 = vpop.f32.mrb[1].mxu1 }
 0x29c   : > { %v3041_v36 = vadd.f32 %v2279_v42, %v2115_v30  ;;  %v2281_v39 = vpop.f32.mrb[2].mxu1 }
 0x29d   : > { %v2282_v40 = vpop.f32.mrb[3].mxu1  ;;  %v2286_v45 = vpack.c.bf16 %v3040_v33, %v3040_v33 }
 0x29e   : > { %v2287_v43 = vpack.c.bf16 %v3041_v36, %v3041_v36 }
 0x2a0   : > { %2617 = vmatprep.mubr.bf16.mxu1 %v2287_v43 }
 0x2a1   : > { %2618 = vmatmul.mubr.bf16.vlgmr.msra.gmra.mrb[4].mxu1 %v2286_v45 }
 0x2c5   : > { %v2195_v14 = vpop.f32.mrb[0].mxu0 }
 0x2c6   : > { %v3038_v32 = vadd.f32 %v2195_v14, %v2103_v27  ;;  %v2197_v34 = vpop.f32.mrb[1].mxu0 }
 0x2c7   : > { %v3039_v35 = vadd.f32 %v2197_v34, %v2107_v29  ;;  %v2199_v37 = vpop.f32.mrb[2].mxu0 }
 0x2c8   : > { %v2200_v53 = vpop.f32.mrb[3].mxu0  ;;  %v2284_v44 = vpack.c.bf16 %v3038_v32, %v3038_v32 }
 0x2c9   : > { %v2285_v41 = vpack.c.bf16 %v3039_v35, %v3039_v35 }
 0x2cb   : > { %2577 = vmatprep.mubr.bf16.mxu0 %v2285_v41 }
 0x2cc   : > { %2578 = vmatmul.mubr.bf16.vlgmr.msra.gmra.mrb[4].mxu0 %v2284_v44 }
 0x374   : > { %v3024_v22 = vpop.f32.mrb[4].mxu1 }
 0x375   : > { %v3025_v47 = vpop.f32.mrb[5].mxu1 }
 0x376   : > { %v3026_v50 = vadd.f32 %v3025_v47, %v3024_v22  ;;  %v3027_v52 = vpop.f32.mrb[6].mxu1 }
 0x377   : > { %v3028_v55 = vpop.f32.mrb[7].mxu1 }
 0x39f   : > { %v3002_v48 = vpop.f32.mrb[4].mxu0 }
 0x3a0   : > { %v3003_v46 = vpop.f32.mrb[5].mxu0 }
 0x3a1   : > { %v3004_v49 = vadd.f32 %v3003_v46, %v3002_v48  ;;  %v3005_v51 = vpop.f32.mrb[6].mxu0 }
 0x3a2   : > { %v3006_v54 = vpop.f32.mrb[7].mxu0 }
 0x3a3   : > { %v2580_v25 = vadd.f32 %v3004_v49, %v2352_v38 }
 0x3a5   : > { %v2620_v56 = vadd.f32 %v3026_v50, %v2580_v25 }
 0x3a7   : > { %2626 = vst.msk [vmem:[#allocation3] sm:$0x1] %vm2625_vm2, %v2620_v56 }
 0x3a8 PF: > { %p3054_p7 = scmp.eq.s32.totalorder %s3570_s25, 3  ;;  %s3523_s27 = smov [#allocation3]  }
 0x3a9   : > { %s2634_s28 = sshll.u32 %s3523_s27, 4  ;;  %s2635_s28 = int_to_ptr.vmem [resolvable:$true] %s2634_s28 }
 0x3aa   : > { %s3483_s29 = scalar_lea.vmem %s2635_s28, 16  ;;  %s3489_s30 = scalar_lea.vmem %s2635_s28, 32 }
 0x3ab   : > { %p3484_p8 = scmp.ne.s32.totalorder %s2635_s28, %s3483_s29  ;;  %p3490_p11 = scmp.lt.s32.totalorder %s2635_s28, %s2635_s28 }
 0x3ac   : > { %p3491_p12 = scmp.lt.s32.totalorder %s3489_s30, %s3483_s29 }
 0x3ad   : > { %p3485_p9 = pnand %p3484_p8, %p3054_p7 }
 0x3ae   : > { %p3492_p13 = por %p3491_p12, %p3490_p11 }
 0x3af   : > { %p3486_p10 = pneg %p3485_p9 }
 0x3b1   : > { %p3493_p0 = pnand %p3492_p13, %p3486_p10 }
 0x3b3   : > { %3496 = shalt.err (!%p3493_p0)
}
 0x3b4   : > { %s3497_s10 = scalar_lea.hbm %s4288_s7, 16 }
 0x3b5   : > { %p3498_p1 = scmp.ne.s32.totalorder %s4288_s7, %s3497_s10  ;;  %p3503_p4 = scmp.lt.u32.totalorder %s3497_s10, %s4288_s7 }
 0x3b7   : > { %p3499_p2 = pnand %p3498_p1, %p3054_p7 }
 0x3b9   : > { %p3500_p3 = pneg %p3499_p2 }
 0x3bb   : > { %p3505_p5 = pnand %p3503_p4, %p3500_p3 }
 0x3bd   : > { %3508 = shalt.err (!%p3505_p5)
}
 0x3be   : > { %3051 = dma.vmem_to_hbm [thread:$0]  (%p3054_p7), %s2635_s28, 16, %s4288_s7, [#allocation4]  }
 0x3bf   : > { %3514 = dma.done.wait (%p3054_p7), [#allocation4], 16  }
 0x3c0   : > { %3516 = vsyncadd (%p3054_p7), [#allocation4], 4294967280 }
 0x3c1 PF: > { %s18_s24 = sadd.s32 1, %s3519_s24  }
 0x3c2   : > { %p15_p6 = scmp.ge.s32.totalorder %s18_s24, 6  }
 0x3c4   :  { %17 = sbr.rel (!%p15_p6) target bundleno = 1 (0x1), region = 86 }
 0x3cb   :  { %2647 = vsyncpa [#allocation4], 1 }
 0x3cc   :  { %2649 = vsyncpa [#allocation4 + $0x1], 1 }

</bundles_post_ra>
